<compile_context>
chip_gen: v6e
topology: v6e:2x2x1
jax: 0.10.0
libtpu: 0.0.40
codegen_flags: <defaults>
</compile_context>

<pallas_src>
import functools

import jax
import jax.numpy as jnp
from jax.experimental import pallas as pl
from jax.experimental.pallas import tpu as pltpu

LANE = 128
SUBLANE = 8
MAX_TILE_M = 1024
VMEM_LIMIT = 32 * 1024 * 1024
BN_EPS = 1e-5
LRELU_SLOPE = 0.2


def _round_up(n, m):
    return ((n + m - 1) // m) * m


def _pad_axis(x, multiple, axis):
    pad = (-x.shape[axis]) % multiple
    if pad == 0:
        return x
    widths = [(0, 0)] * x.ndim
    widths[axis] = (0, pad)
    return jnp.pad(x, widths)


def _pick_tile_m(m_true, kp, ocp):
    """Largest sublane-aligned M tile whose double-buffered footprint stays
    comfortably inside the scoped-VMEM budget."""
    per_row_bytes = kp * 2 + ocp * 4 + ocp * 2  # bf16 patches + f32 acc + bf16 out
    tile_m = min(MAX_TILE_M,
                 max(SUBLANE, (VMEM_LIMIT // 4) // max(per_row_bytes, 1)))
    tile_m = (tile_m // SUBLANE) * SUBLANE
    if m_true <= tile_m:
        return _round_up(max(m_true, SUBLANE), SUBLANE)
    return tile_m


# ----------------------------------------------------------------------------
# Kernels
# ----------------------------------------------------------------------------
def _conv_act_kernel(p_ref, w_ref, b_ref, o_ref, *, use_lrelu):
    """Fused (patches @ W + b) -> optional LeakyReLU.  f32 epilogue, bf16 store."""
    y = jnp.dot(p_ref[...], w_ref[...], preferred_element_type=jnp.float32)
    y = y + b_ref[...]
    if use_lrelu:
        y = jnp.where(y >= 0.0, y, LRELU_SLOPE * y)
    o_ref[...] = y.astype(o_ref.dtype)


def _conv_bn_act_fused_kernel(p_ref, w_ref, b_ref, g_ref, bt_ref, o_ref, *,
                              m_true, use_lrelu):
    """Single-tile fused conv + training-mode BatchNorm + affine + LeakyReLU.

    Used when the whole M dimension fits one tile: batch statistics are taken
    from the in-register f32 conv result (rows beyond the true M are masked),
    so no second pass / HBM round-trip of y is needed.
    """
    y = jnp.dot(p_ref[...], w_ref[...], preferred_element_type=jnp.float32)
    y = y + b_ref[...]

    ridx = jax.lax.broadcasted_iota(jnp.int32, (y.shape[0], 1), 0)
    ym = jnp.where(ridx < m_true, y, 0.0)
    inv_m = 1.0 / float(m_true)
    mean = jnp.sum(ym, axis=0, keepdims=True) * inv_m
    # TODO(synk): E[x^2]-E[x]^2 in f32 can lose precision if |mean| >> std;
    # switch to centered accumulation if this is reused with trained weights.
    var = jnp.maximum(jnp.sum(ym * ym, axis=0, keepdims=True) * inv_m
                      - mean * mean, 0.0)

    y = (y - mean) * jax.lax.rsqrt(var + BN_EPS)
    y = y * g_ref[...] + bt_ref[...]
    if use_lrelu:
        y = jnp.where(y >= 0.0, y, LRELU_SLOPE * y)
    o_ref[...] = y.astype(o_ref.dtype)


def _conv_partial_stats_kernel(p_ref, w_ref, b_ref, o_ref, s_ref, *,
                               tile_m, m_true):
    """Conv + bias for one M tile; writes per-tile partial sum / sumsq into a
    distinct stats block (no revisited accumulator, so the M axis stays
    "parallel" and can be split across TensorCores on v7x)."""
    i = pl.program_id(0)
    y = jnp.dot(p_ref[...], w_ref[...], preferred_element_type=jnp.float32)
    y = y + b_ref[...]
    o_ref[...] = y.astype(o_ref.dtype)

    row = i * tile_m + jax.lax.broadcasted_iota(jnp.int32, (tile_m, 1), 0)
    ym = jnp.where(row < m_true, y, 0.0)
    s_ref[...] = jnp.zeros_like(s_ref)
    s_ref[0:1, :] = jnp.sum(ym, axis=0, keepdims=True)
    s_ref[1:2, :] = jnp.sum(ym * ym, axis=0, keepdims=True)


def _bn_act_kernel(y_ref, s_ref, g_ref, bt_ref, o_ref, *, m_true, use_lrelu):
    """Pass 2 of the multi-tile BN path: reduce per-tile partial stats, then
    normalize + affine + optional LeakyReLU (f32 math, bf16 store)."""
    s = s_ref[...]
    ridx = jax.lax.broadcasted_iota(jnp.int32, (s.shape[0], 1), 0) % SUBLANE
    total_sum = jnp.sum(jnp.where(ridx == 0, s, 0.0), axis=0, keepdims=True)
    total_sq = jnp.sum(jnp.where(ridx == 1, s, 0.0), axis=0, keepdims=True)
    inv_m = 1.0 / float(m_true)
    mean = total_sum * inv_m
    var = jnp.maximum(total_sq * inv_m - mean * mean, 0.0)

    y = y_ref[...].astype(jnp.float32)
    y = (y - mean) * jax.lax.rsqrt(var + BN_EPS)
    y = y * g_ref[...] + bt_ref[...]
    if use_lrelu:
        y = jnp.where(y >= 0.0, y, LRELU_SLOPE * y)
    o_ref[...] = y.astype(o_ref.dtype)


# ----------------------------------------------------------------------------
# Layer wrapper: padding, tiling, pallas_call plumbing
# ----------------------------------------------------------------------------
def fused_conv_layer(patches, w, b, gamma=None, beta=None, *,
                     use_bn=False, use_lrelu=False):
    """patches: [M, K] (any float dtype; cast to bf16), w: [K, OC] f32,
    b/gamma/beta: [1, OC] f32.  Returns [M, OC] bf16."""
    m_true = patches.shape[0]
    oc_true = w.shape[1]

    # Lane-dense zero padding on K and OC (numerically identical).
    patches = _pad_axis(patches.astype(jnp.bfloat16), LANE, 1)
    w = _pad_axis(_pad_axis(w, LANE, 0), LANE, 1).astype(jnp.bfloat16)
    b = _pad_axis(b.astype(jnp.float32), LANE, 1)
    kp = patches.shape[1]
    ocp = w.shape[1]

    tile_m = _pick_tile_m(m_true, kp, ocp)
    patches = _pad_axis(patches, tile_m, 0)
    mp = patches.shape[0]
    num_tiles = mp // tile_m

    flops = 2 * mp * kp * ocp
    bytes_accessed = patches.size * 2 + w.size * 2 + b.size * 4 + mp * ocp * 2
    common_params = pltpu.CompilerParams(
        dimension_semantics=("parallel",), vmem_limit_bytes=VMEM_LIMIT)

    p_spec = pl.BlockSpec((tile_m, kp), lambda i: (i, 0))
    w_spec = pl.BlockSpec((kp, ocp), lambda i: (0, 0))
    v_spec = pl.BlockSpec((1, ocp), lambda i: (0, 0))      # bias / gamma / beta
    o_spec = pl.BlockSpec((tile_m, ocp), lambda i: (i, 0))

    if not use_bn:
        kernel = functools.partial(_conv_act_kernel, use_lrelu=use_lrelu)
        y = pl.pallas_call(
            kernel,
            out_shape=jax.ShapeDtypeStruct((mp, ocp), jnp.bfloat16),
            grid=(num_tiles,),
            in_specs=[p_spec, w_spec, v_spec],
            out_specs=o_spec,
            compiler_params=common_params,
            cost_estimate=pl.CostEstimate(flops=flops, transcendentals=0,
                                          bytes_accessed=bytes_accessed),
        )(patches, w, b)
        return y[:m_true, :oc_true]

    gamma = _pad_axis(gamma.astype(jnp.float32), LANE, 1)
    beta = _pad_axis(beta.astype(jnp.float32), LANE, 1)

    if num_tiles == 1:
        # Whole M in one tile: fully fused conv + BN + activation, one launch.
        kernel = functools.partial(_conv_bn_act_fused_kernel,
                                   m_true=m_true, use_lrelu=use_lrelu)
        y = pl.pallas_call(
            kernel,
            out_shape=jax.ShapeDtypeStruct((mp, ocp), jnp.bfloat16),
            grid=(1,),
            in_specs=[p_spec, w_spec, v_spec, v_spec, v_spec],
            out_specs=o_spec,
            compiler_params=common_params,
            cost_estimate=pl.CostEstimate(flops=flops, transcendentals=ocp,
                                          bytes_accessed=bytes_accessed),
        )(patches, w, b, gamma, beta)
        return y[:m_true, :oc_true]

    # --- Multi-tile BN: pass 1 = conv + per-tile partial stats (parallel) ----
    s_rows = num_tiles * SUBLANE
    conv_kernel = functools.partial(_conv_partial_stats_kernel,
                                    tile_m=tile_m, m_true=m_true)
    y, stats = pl.pallas_call(
        conv_kernel,
        out_shape=(jax.ShapeDtypeStruct((mp, ocp), jnp.bfloat16),
                   jax.ShapeDtypeStruct((s_rows, ocp), jnp.float32)),
        grid=(num_tiles,),
        in_specs=[p_spec, w_spec, v_spec],
        out_specs=(o_spec, pl.BlockSpec((SUBLANE, ocp), lambda i: (i, 0))),
        compiler_params=common_params,
        cost_estimate=pl.CostEstimate(flops=flops, transcendentals=0,
                                      bytes_accessed=bytes_accessed),
    )(patches, w, b)

    # --- Pass 2 = reduce partials in-kernel, normalize + affine + activation -
    bn_kernel = functools.partial(_bn_act_kernel, m_true=m_true,
                                  use_lrelu=use_lrelu)
    out = pl.pallas_call(
        bn_kernel,
        out_shape=jax.ShapeDtypeStruct((mp, ocp), jnp.bfloat16),
        grid=(num_tiles,),
        in_specs=[o_spec,
                  pl.BlockSpec((s_rows, ocp), lambda i: (0, 0)),
                  v_spec, v_spec],
        out_specs=o_spec,
        compiler_params=common_params,
        cost_estimate=pl.CostEstimate(flops=6 * mp * ocp, transcendentals=ocp,
                                      bytes_accessed=2 * mp * ocp * 2),
    )(y, stats, gamma, beta)
    return out[:m_true, :oc_true]


# ----------------------------------------------------------------------------
# JAX glue: im2col patch extraction (reshape/slice only; matmul is in-kernel)
# ----------------------------------------------------------------------------
# TODO(synk): replace im2col with an in-kernel sum of k*k shifted matmuls over
# the un-duplicated NHWC activation to avoid materializing the k*k-duplicated
# patch matrix in HBM at large batch sizes.
def im2col(x_nhwc, k, s, p):
    N, H, W, C = x_nhwc.shape
    xp = jnp.pad(x_nhwc, ((0, 0), (p, p), (p, p), (0, 0)))
    OH = (H + 2 * p - k) // s + 1
    OW = (W + 2 * p - k) // s + 1
    cols = []
    for kh in range(k):
        for kw in range(k):
            cols.append(xp[:, kh:kh + s * (OH - 1) + 1:s,
                              kw:kw + s * (OW - 1) + 1:s, :])  # [N,OH,OW,C]
    pat = jnp.stack(cols, axis=3)                              # [N,OH,OW,k*k,C]
    return pat.reshape(N * OH * OW, k * k * C), (N, OH, OW)


# ----------------------------------------------------------------------------
# Discriminator forward (input is NCHW like PyTorch)
# ----------------------------------------------------------------------------
def discriminator_forward(x_nchw, params):
    # NHWC, bf16 intermediates end-to-end (epilogue math stays f32 in-kernel).
    x = jnp.transpose(x_nchw, (0, 2, 3, 1)).astype(jnp.bfloat16)

    # Layer 1: Conv(C -> f, k4 s2 p1) + LeakyReLU(0.2)
    p, (N, OH, OW) = im2col(x, 4, 2, 1)
    y = fused_conv_layer(p, params["w1"], params["b1"], use_lrelu=True)
    x = y.reshape(N, OH, OW, -1)

    # Layer 2: Conv(f -> 2f, k4 s2 p1) + BatchNorm2d (training-mode stats)
    p, (N, OH, OW) = im2col(x, 4, 2, 1)
    y = fused_conv_layer(p, params["w2"], params["b2"],
                         params["g2"], params["bt2"], use_bn=True)
    x = y.reshape(N, OH, OW, -1)

    # Layer 3: Conv(2f -> 4f, k4 s2 p1) + BatchNorm2d + LeakyReLU(0.2)
    p, (N, OH, OW) = im2col(x, 4, 2, 1)
    y = fused_conv_layer(p, params["w3"], params["b3"],
                         params["g3"], params["bt3"],
                         use_bn=True, use_lrelu=True)
    x = y.reshape(N, OH, OW, -1)

    # Layer 4: Conv(4f -> 1, k4 s1 p0) + Sigmoid.  The 4x4 window covers the
    # whole 4x4 map (no patch duplication) and is a tiny [N, 512]x[512, 1]
    # matvec; per the perf review this is cheaper as a plain XLA dot than a
    # heavily padded pallas_call, and the exact sigmoid keeps outputs in [0,1].
    p, _ = im2col(x, 4, 1, 0)
    logits = jnp.dot(p.astype(jnp.float32), params["w4"]) + params["b4"]
    return jax.nn.sigmoid(logits).reshape(-1)


# ----------------------------------------------------------------------------
# Deterministic parameter init (synthetic; matches the torch module's shapes)
# ----------------------------------------------------------------------------
def init_params(key, img_channels, f_size):
    ks = jax.random.split(key, 8)

    def conv_w(k, ic, oc):  # [KH, KW, IC, OC]  (== torch [OC,IC,KH,KW] transposed)
        return jax.random.normal(k, (4, 4, ic, oc), jnp.float32) * 0.05

    def conv_b(k, oc):
        return jax.random.normal(k, (1, oc), jnp.float32) * 0.02

    f = f_size
    return {
        "w1": conv_w(ks[0], img_channels, f).reshape(4 * 4 * img_channels, f),
        "b1": conv_b(ks[1], f),
        "w2": conv_w(ks[2], f, 2 * f).reshape(4 * 4 * f, 2 * f),
        "b2": conv_b(ks[3], 2 * f),
        "w3": conv_w(ks[4], 2 * f, 4 * f).reshape(4 * 4 * 2 * f, 4 * f),
        "b3": conv_b(ks[5], 4 * f),
        "w4": conv_w(ks[6], 4 * f, 1).reshape(4 * 4 * 4 * f, 1),
        "b4": conv_b(ks[7], 1),
        # BatchNorm affine params (torch defaults: gamma=1, beta=0)
        "g2": jnp.ones((1, 2 * f), jnp.float32),
        "bt2": jnp.zeros((1, 2 * f), jnp.float32),
        "g3": jnp.ones((1, 4 * f), jnp.float32),
        "bt3": jnp.zeros((1, 4 * f), jnp.float32),
    }


if __name__ == "__main__":
    # 32x32 input so the final 4x4/s1/p0 conv lands on a 4x4 feature map
    # (32 -> 16 -> 8 -> 4 -> 1), exactly as the module expects.
    N, img_channels, H, W = 2, 3, 32, 32
    f_size = 8

    key = jax.random.PRNGKey(0)
    kx, kp = jax.random.split(key)
    x = jax.random.normal(kx, (N, img_channels, H, W), jnp.float32)  # NCHW
    params = init_params(kp, img_channels, f_size)

    fwd = jax.jit(functools.partial(discriminator_forward, params=params))
    out = jax.block_until_ready(fwd(x))

    assert out.shape == (N,), out.shape
    assert bool(jnp.all(jnp.isfinite(out)))
    assert bool(jnp.all((out >= 0.0) & (out <= 1.0)))  # exact sigmoid range
    print("KERNEL_OK")
</pallas_src>

<mosaic_0001>
module attributes {stable_mosaic.version = 11 : i64} {
  func.func @_conv_act_kernel(%arg0: i32, %arg1: memref<512x128xbf16, #tpu.memory_space<vmem>>, %arg2: memref<128x128xbf16, #tpu.memory_space<vmem>>, %arg3: memref<1x128xf32, #tpu.memory_space<vmem>>, %arg4: memref<512x128xbf16, #tpu.memory_space<vmem>>) attributes {dimension_semantics = [#tpu.dimension_semantics<parallel>], iteration_bounds = array<i64: 1>, scalar_prefetch = 0 : i64, scratch_operands = 0 : i64, tpu.core_type = #tpu.core_type<tc>, window_params = [{transform_indices = @transform_0, window_bounds = array<i64: 512, 128>}, {pipeline_mode = #tpu.pipeline_mode<synchronous>, transform_indices = @transform_1, window_bounds = array<i64: 128, 128>}, {pipeline_mode = #tpu.pipeline_mode<synchronous>, transform_indices = @transform_2, window_bounds = array<i64: 1, 128>}, {transform_indices = @transform_3, window_bounds = array<i64: 512, 128>}]} {
    %c0 = arith.constant 0 : index
    %c0_0 = arith.constant 0 : index
    %0 = vector.load %arg1[%c0, %c0_0] : memref<512x128xbf16, #tpu.memory_space<vmem>>, vector<512x128xbf16>
    %c0_1 = arith.constant 0 : index
    %c0_2 = arith.constant 0 : index
    %1 = vector.load %arg2[%c0_1, %c0_2] : memref<128x128xbf16, #tpu.memory_space<vmem>>, vector<128x128xbf16>
    %cst = arith.constant dense<0.000000e+00> : vector<512x128xf32>
    %2 = tpu.matmul %0, %1, %cst {dimension_numbers = #tpu.dot_dimension_numbers<[1], [0], [0], [1], [0, 0, 1, 1], [], []>} : vector<512x128xbf16>, vector<128x128xbf16>, vector<512x128xf32> -> vector<512x128xf32>
    %c0_3 = arith.constant 0 : index
    %c0_4 = arith.constant 0 : index
    %3 = vector.load %arg3[%c0_3, %c0_4] : memref<1x128xf32, #tpu.memory_space<vmem>>, vector<1x128xf32>
    %4 = vector.broadcast %3 : vector<1x128xf32> to vector<512x128xf32>
    %5 = arith.addf %2, %4 : vector<512x128xf32>
    %cst_5 = arith.constant 0.000000e+00 : f32
    %6 = vector.broadcast %cst_5 : f32 to vector<512x128xf32>
    %7 = arith.cmpf oge, %5, %6 : vector<512x128xf32>
    %cst_6 = arith.constant 2.000000e-01 : f32
    %8 = vector.broadcast %cst_6 : f32 to vector<512x128xf32>
    %9 = arith.mulf %8, %5 : vector<512x128xf32>
    %10 = arith.select %7, %5, %9 : vector<512x128xi1>, vector<512x128xf32>
    %11 = arith.truncf %10 : vector<512x128xf32> to vector<512x128xbf16>
    %c0_7 = arith.constant 0 : index
    %c0_8 = arith.constant 0 : index
    %12 = vector.load %arg4[%c0_7, %c0_8] : memref<512x128xbf16, #tpu.memory_space<vmem>>, vector<512x128xbf16>
    tpu.vector_store %arg4[%c0_7, %c0_8], %11 {strides = array<i32>} : memref<512x128xbf16, #tpu.memory_space<vmem>>, vector<512x128xbf16>,
    return
  }
  func.func @transform_0(%arg0: i32) -> (i32, i32) {
    %c0_i32 = arith.constant 0 : i32
    %c0_i32_0 = arith.constant 0 : i32
    return %arg0, %c0_i32 : i32, i32
  }
  func.func @transform_1(%arg0: i32) -> (i32, i32) {
    %c0_i32 = arith.constant 0 : i32
    %c0_i32_0 = arith.constant 0 : i32
    %c0_i32_1 = arith.constant 0 : i32
    return %c0_i32, %c0_i32_0 : i32, i32
  }
  func.func @transform_2(%arg0: i32) -> (i32, i32) {
    %c0_i32 = arith.constant 0 : i32
    %c0_i32_0 = arith.constant 0 : i32
    %c0_i32_1 = arith.constant 0 : i32
    return %c0_i32, %c0_i32_0 : i32, i32
  }
  func.func @transform_3(%arg0: i32) -> (i32, i32) {
    %c0_i32 = arith.constant 0 : i32
    %c0_i32_0 = arith.constant 0 : i32
    return %arg0, %c0_i32 : i32, i32
  }
}

module attributes {stable_mosaic.version = 11 : i64} {
  func.func @_conv_bn_act_fused_kernel(%arg0: i32, %arg1: memref<128x128xbf16, #tpu.memory_space<vmem>>, %arg2: memref<128x128xbf16, #tpu.memory_space<vmem>>, %arg3: memref<1x128xf32, #tpu.memory_space<vmem>>, %arg4: memref<1x128xf32, #tpu.memory_space<vmem>>, %arg5: memref<1x128xf32, #tpu.memory_space<vmem>>, %arg6: memref<128x128xbf16, #tpu.memory_space<vmem>>) attributes {dimension_semantics = [#tpu.dimension_semantics<parallel>], iteration_bounds = array<i64: 1>, scalar_prefetch = 0 : i64, scratch_operands = 0 : i64, tpu.core_type = #tpu.core_type<tc>, window_params = [{transform_indices = @transform_0, window_bounds = array<i64: 128, 128>}, {pipeline_mode = #tpu.pipeline_mode<synchronous>, transform_indices = @transform_1, window_bounds = array<i64: 128, 128>}, {pipeline_mode = #tpu.pipeline_mode<synchronous>, transform_indices = @transform_2, window_bounds = array<i64: 1, 128>}, {pipeline_mode = #tpu.pipeline_mode<synchronous>, transform_indices = @transform_3, window_bounds = array<i64: 1, 128>}, {pipeline_mode = #tpu.pipeline_mode<synchronous>, transform_indices = @transform_4, window_bounds = array<i64: 1, 128>}, {transform_indices = @transform_5, window_bounds = array<i64: 128, 128>}]} {
    %c0 = arith.constant 0 : index
    %c0_0 = arith.constant 0 : index
    %0 = vector.load %arg1[%c0, %c0_0] : memref<128x128xbf16, #tpu.memory_space<vmem>>, vector<128x128xbf16>
    %c0_1 = arith.constant 0 : index
    %c0_2 = arith.constant 0 : index
    %1 = vector.load %arg2[%c0_1, %c0_2] : memref<128x128xbf16, #tpu.memory_space<vmem>>, vector<128x128xbf16>
    %cst = arith.constant dense<0.000000e+00> : vector<128x128xf32>
    %2 = tpu.matmul %0, %1, %cst {dimension_numbers = #tpu.dot_dimension_numbers<[1], [0], [0], [1], [0, 0, 1, 1], [], []>} : vector<128x128xbf16>, vector<128x128xbf16>, vector<128x128xf32> -> vector<128x128xf32>
    %c0_3 = arith.constant 0 : index
    %c0_4 = arith.constant 0 : index
    %3 = vector.load %arg3[%c0_3, %c0_4] : memref<1x128xf32, #tpu.memory_space<vmem>>, vector<1x128xf32>
    %4 = vector.broadcast %3 : vector<1x128xf32> to vector<128x128xf32>
    %5 = arith.addf %2, %4 : vector<128x128xf32>
    %6 = tpu.iota {dimensions = array<i32: 0>} : vector<128x1xi32>
    %c128_i32 = arith.constant 128 : i32
    %7 = vector.broadcast %c128_i32 : i32 to vector<128x1xi32>
    %8 = arith.cmpi slt, %6, %7 : vector<128x1xi32>
    %cst_5 = arith.constant 0.000000e+00 : f32
    %9 = vector.shape_cast %8 : vector<128x1xi1> to vector<128x1xi1>
    %10 = vector.broadcast %9 : vector<128x1xi1> to vector<128x128xi1>
    %11 = vector.broadcast %cst_5 : f32 to vector<128x128xf32>
    %12 = arith.select %10, %5, %11 : vector<128x128xi1>, vector<128x128xf32>
    %cst_6 = arith.constant dense<0.000000e+00> : vector<128xf32>
    %13 = vector.multi_reduction <add>, %12, %cst_6 [0] : vector<128x128xf32> to vector<128xf32>
    %14 = vector.shape_cast %13 : vector<128xf32> to vector<1x128xf32>
    %cst_7 = arith.constant 7.812500e-03 : f32
    %15 = vector.broadcast %cst_7 : f32 to vector<1x128xf32>
    %16 = arith.mulf %14, %15 : vector<1x128xf32>
    %17 = arith.mulf %12, %12 : vector<128x128xf32>
    %cst_8 = arith.constant dense<0.000000e+00> : vector<128xf32>
    %18 = vector.multi_reduction <add>, %17, %cst_8 [0] : vector<128x128xf32> to vector<128xf32>
    %19 = vector.shape_cast %18 : vector<128xf32> to vector<1x128xf32>
    %cst_9 = arith.constant 7.812500e-03 : f32
    %20 = vector.broadcast %cst_9 : f32 to vector<1x128xf32>
    %21 = arith.mulf %19, %20 : vector<1x128xf32>
    %22 = arith.mulf %16, %16 : vector<1x128xf32>
    %23 = arith.subf %21, %22 : vector<1x128xf32>
    %cst_10 = arith.constant 0.000000e+00 : f32
    %24 = vector.broadcast %cst_10 : f32 to vector<1x128xf32>
    %25 = arith.maximumf %23, %24 : vector<1x128xf32>
    %26 = vector.broadcast %16 : vector<1x128xf32> to vector<128x128xf32>
    %27 = arith.subf %5, %26 : vector<128x128xf32>
    %cst_11 = arith.constant 9.99999974E-6 : f32
    %28 = vector.broadcast %cst_11 : f32 to vector<1x128xf32>
    %29 = arith.addf %25, %28 : vector<1x128xf32>
    %30 = math.rsqrt %29 : vector<1x128xf32>
    %31 = vector.broadcast %30 : vector<1x128xf32> to vector<128x128xf32>
    %32 = arith.mulf %27, %31 : vector<128x128xf32>
    %c0_12 = arith.constant 0 : index
    %c0_13 = arith.constant 0 : index
    %33 = vector.load %arg4[%c0_12, %c0_13] : memref<1x128xf32, #tpu.memory_space<vmem>>, vector<1x128xf32>
    %34 = vector.broadcast %33 : vector<1x128xf32> to vector<128x128xf32>
    %35 = arith.mulf %32, %34 : vector<128x128xf32>
    %c0_14 = arith.constant 0 : index
    %c0_15 = arith.constant 0 : index
    %36 = vector.load %arg5[%c0_14, %c0_15] : memref<1x128xf32, #tpu.memory_space<vmem>>, vector<1x128xf32>
    %37 = vector.broadcast %36 : vector<1x128xf32> to vector<128x128xf32>
    %38 = arith.addf %35, %37 : vector<128x128xf32>
    %39 = arith.truncf %38 : vector<128x128xf32> to vector<128x128xbf16>
    %c0_16 = arith.constant 0 : index
    %c0_17 = arith.constant 0 : index
    %40 = vector.load %arg6[%c0_16, %c0_17] : memref<128x128xbf16, #tpu.memory_space<vmem>>, vector<128x128xbf16>
    tpu.vector_store %arg6[%c0_16, %c0_17], %39 {strides = array<i32>} : memref<128x128xbf16, #tpu.memory_space<vmem>>, vector<128x128xbf16>,
    return
  }
  func.func @transform_0(%arg0: i32) -> (i32, i32) {
    %c0_i32 = arith.constant 0 : i32
    %c0_i32_0 = arith.constant 0 : i32
    return %arg0, %c0_i32 : i32, i32
  }
  func.func @transform_1(%arg0: i32) -> (i32, i32) {
    %c0_i32 = arith.constant 0 : i32
    %c0_i32_0 = arith.constant 0 : i32
    %c0_i32_1 = arith.constant 0 : i32
    return %c0_i32, %c0_i32_0 : i32, i32
  }
  func.func @transform_2(%arg0: i32) -> (i32, i32) {
    %c0_i32 = arith.constant 0 : i32
    %c0_i32_0 = arith.constant 0 : i32
    %c0_i32_1 = arith.constant 0 : i32
    return %c0_i32, %c0_i32_0 : i32, i32
  }
  func.func @transform_3(%arg0: i32) -> (i32, i32) {
    %c0_i32 = arith.constant 0 : i32
    %c0_i32_0 = arith.constant 0 : i32
    %c0_i32_1 = arith.constant 0 : i32
    return %c0_i32, %c0_i32_0 : i32, i32
  }
  func.func @transform_4(%arg0: i32) -> (i32, i32) {
    %c0_i32 = arith.constant 0 : i32
    %c0_i32_0 = arith.constant 0 : i32
    %c0_i32_1 = arith.constant 0 : i32
    return %c0_i32, %c0_i32_0 : i32, i32
  }
  func.func @transform_5(%arg0: i32) -> (i32, i32) {
    %c0_i32 = arith.constant 0 : i32
    %c0_i32_0 = arith.constant 0 : i32
    return %arg0, %c0_i32 : i32, i32
  }
}

module attributes {stable_mosaic.version = 11 : i64} {
  func.func @_conv_bn_act_fused_kernel(%arg0: i32, %arg1: memref<32x256xbf16, #tpu.memory_space<vmem>>, %arg2: memref<256x128xbf16, #tpu.memory_space<vmem>>, %arg3: memref<1x128xf32, #tpu.memory_space<vmem>>, %arg4: memref<1x128xf32, #tpu.memory_space<vmem>>, %arg5: memref<1x128xf32, #tpu.memory_space<vmem>>, %arg6: memref<32x128xbf16, #tpu.memory_space<vmem>>) attributes {dimension_semantics = [#tpu.dimension_semantics<parallel>], iteration_bounds = array<i64: 1>, scalar_prefetch = 0 : i64, scratch_operands = 0 : i64, tpu.core_type = #tpu.core_type<tc>, window_params = [{transform_indices = @transform_0, window_bounds = array<i64: 32, 256>}, {pipeline_mode = #tpu.pipeline_mode<synchronous>, transform_indices = @transform_1, window_bounds = array<i64: 256, 128>}, {pipeline_mode = #tpu.pipeline_mode<synchronous>, transform_indices = @transform_2, window_bounds = array<i64: 1, 128>}, {pipeline_mode = #tpu.pipeline_mode<synchronous>, transform_indices = @transform_3, window_bounds = array<i64: 1, 128>}, {pipeline_mode = #tpu.pipeline_mode<synchronous>, transform_indices = @transform_4, window_bounds = array<i64: 1, 128>}, {transform_indices = @transform_5, window_bounds = array<i64: 32, 128>}]} {
    %c0 = arith.constant 0 : index
    %c0_0 = arith.constant 0 : index
    %0 = vector.load %arg1[%c0, %c0_0] : memref<32x256xbf16, #tpu.memory_space<vmem>>, vector<32x256xbf16>
    %c0_1 = arith.constant 0 : index
    %c0_2 = arith.constant 0 : index
    %1 = vector.load %arg2[%c0_1, %c0_2] : memref<256x128xbf16, #tpu.memory_space<vmem>>, vector<256x128xbf16>
    %cst = arith.constant dense<0.000000e+00> : vector<32x128xf32>
    %2 = tpu.matmul %0, %1, %cst {dimension_numbers = #tpu.dot_dimension_numbers<[1], [0], [0], [1], [0, 0, 1, 1], [], []>} : vector<32x256xbf16>, vector<256x128xbf16>, vector<32x128xf32> -> vector<32x128xf32>
    %c0_3 = arith.constant 0 : index
    %c0_4 = arith.constant 0 : index
    %3 = vector.load %arg3[%c0_3, %c0_4] : memref<1x128xf32, #tpu.memory_space<vmem>>, vector<1x128xf32>
    %4 = vector.broadcast %3 : vector<1x128xf32> to vector<32x128xf32>
    %5 = arith.addf %2, %4 : vector<32x128xf32>
    %6 = tpu.iota {dimensions = array<i32: 0>} : vector<32x1xi32>
    %c32_i32 = arith.constant 32 : i32
    %7 = vector.broadcast %c32_i32 : i32 to vector<32x1xi32>
    %8 = arith.cmpi slt, %6, %7 : vector<32x1xi32>
    %cst_5 = arith.constant 0.000000e+00 : f32
    %9 = vector.shape_cast %8 : vector<32x1xi1> to vector<32x1xi1>
    %10 = vector.broadcast %9 : vector<32x1xi1> to vector<32x128xi1>
    %11 = vector.broadcast %cst_5 : f32 to vector<32x128xf32>
    %12 = arith.select %10, %5, %11 : vector<32x128xi1>, vector<32x128xf32>
    %cst_6 = arith.constant dense<0.000000e+00> : vector<128xf32>
    %13 = vector.multi_reduction <add>, %12, %cst_6 [0] : vector<32x128xf32> to vector<128xf32>
    %14 = vector.shape_cast %13 : vector<128xf32> to vector<1x128xf32>
    %cst_7 = arith.constant 3.125000e-02 : f32
    %15 = vector.broadcast %cst_7 : f32 to vector<1x128xf32>
    %16 = arith.mulf %14, %15 : vector<1x128xf32>
    %17 = arith.mulf %12, %12 : vector<32x128xf32>
    %cst_8 = arith.constant dense<0.000000e+00> : vector<128xf32>
    %18 = vector.multi_reduction <add>, %17, %cst_8 [0] : vector<32x128xf32> to vector<128xf32>
    %19 = vector.shape_cast %18 : vector<128xf32> to vector<1x128xf32>
    %cst_9 = arith.constant 3.125000e-02 : f32
    %20 = vector.broadcast %cst_9 : f32 to vector<1x128xf32>
    %21 = arith.mulf %19, %20 : vector<1x128xf32>
    %22 = arith.mulf %16, %16 : vector<1x128xf32>
    %23 = arith.subf %21, %22 : vector<1x128xf32>
    %cst_10 = arith.constant 0.000000e+00 : f32
    %24 = vector.broadcast %cst_10 : f32 to vector<1x128xf32>
    %25 = arith.maximumf %23, %24 : vector<1x128xf32>
    %26 = vector.broadcast %16 : vector<1x128xf32> to vector<32x128xf32>
    %27 = arith.subf %5, %26 : vector<32x128xf32>
    %cst_11 = arith.constant 9.99999974E-6 : f32
    %28 = vector.broadcast %cst_11 : f32 to vector<1x128xf32>
    %29 = arith.addf %25, %28 : vector<1x128xf32>
    %30 = math.rsqrt %29 : vector<1x128xf32>
    %31 = vector.broadcast %30 : vector<1x128xf32> to vector<32x128xf32>
    %32 = arith.mulf %27, %31 : vector<32x128xf32>
    %c0_12 = arith.constant 0 : index
    %c0_13 = arith.constant 0 : index
    %33 = vector.load %arg4[%c0_12, %c0_13] : memref<1x128xf32, #tpu.memory_space<vmem>>, vector<1x128xf32>
    %34 = vector.broadcast %33 : vector<1x128xf32> to vector<32x128xf32>
    %35 = arith.mulf %32, %34 : vector<32x128xf32>
    %c0_14 = arith.constant 0 : index
    %c0_15 = arith.constant 0 : index
    %36 = vector.load %arg5[%c0_14, %c0_15] : memref<1x128xf32, #tpu.memory_space<vmem>>, vector<1x128xf32>
    %37 = vector.broadcast %36 : vector<1x128xf32> to vector<32x128xf32>
    %38 = arith.addf %35, %37 : vector<32x128xf32>
    %cst_16 = arith.constant 0.000000e+00 : f32
    %39 = vector.broadcast %cst_16 : f32 to vector<32x128xf32>
    %40 = arith.cmpf oge, %38, %39 : vector<32x128xf32>
    %cst_17 = arith.constant 2.000000e-01 : f32
    %41 = vector.broadcast %cst_17 : f32 to vector<32x128xf32>
    %42 = arith.mulf %41, %38 : vector<32x128xf32>
    %43 = arith.select %40, %38, %42 : vector<32x128xi1>, vector<32x128xf32>
    %44 = arith.truncf %43 : vector<32x128xf32> to vector<32x128xbf16>
    %c0_18 = arith.constant 0 : index
    %c0_19 = arith.constant 0 : index
    %45 = vector.load %arg6[%c0_18, %c0_19] : memref<32x128xbf16, #tpu.memory_space<vmem>>, vector<32x128xbf16>
    tpu.vector_store %arg6[%c0_18, %c0_19], %44 {strides = array<i32>} : memref<32x128xbf16, #tpu.memory_space<vmem>>, vector<32x128xbf16>,
    return
  }
  func.func @transform_0(%arg0: i32) -> (i32, i32) {
    %c0_i32 = arith.constant 0 : i32
    %c0_i32_0 = arith.constant 0 : i32
    return %arg0, %c0_i32 : i32, i32
  }
  func.func @transform_1(%arg0: i32) -> (i32, i32) {
    %c0_i32 = arith.constant 0 : i32
    %c0_i32_0 = arith.constant 0 : i32
    %c0_i32_1 = arith.constant 0 : i32
    return %c0_i32, %c0_i32_0 : i32, i32
  }
  func.func @transform_2(%arg0: i32) -> (i32, i32) {
    %c0_i32 = arith.constant 0 : i32
    %c0_i32_0 = arith.constant 0 : i32
    %c0_i32_1 = arith.constant 0 : i32
    return %c0_i32, %c0_i32_0 : i32, i32
  }
  func.func @transform_3(%arg0: i32) -> (i32, i32) {
    %c0_i32 = arith.constant 0 : i32
    %c0_i32_0 = arith.constant 0 : i32
    %c0_i32_1 = arith.constant 0 : i32
    return %c0_i32, %c0_i32_0 : i32, i32
  }
  func.func @transform_4(%arg0: i32) -> (i32, i32) {
    %c0_i32 = arith.constant 0 : i32
    %c0_i32_0 = arith.constant 0 : i32
    %c0_i32_1 = arith.constant 0 : i32
    return %c0_i32, %c0_i32_0 : i32, i32
  }
  func.func @transform_5(%arg0: i32) -> (i32, i32) {
    %c0_i32 = arith.constant 0 : i32
    %c0_i32_0 = arith.constant 0 : i32
    return %arg0, %c0_i32 : i32, i32
  }
}

</mosaic_0001>

<bundles_post_ra>
// kernel: discriminator_forward.3
= control target key start
LH: loop header
LB: loop body
LE: loop exit
PB: predicated region body
PF: predicated region fallthrough
CT: control target
= control target key end

     0   :  { %s1991_s1 = inlined_call_operand.vmem [shape: bf16[128,128], index: 1, kind: input, shape index: {}]   ;;  %s1992_s0 = inlined_call_operand.vmem [shape: bf16[512,128], index: 0, kind: input, shape index: {}]   ;;  %s1993_s2 = inlined_call_operand.vmem [shape: f32[1,128], index: 2, kind: input, shape index: {}]   ;;  %s1994_s3 = inlined_call_operand.vmem [shape: bf16[512,128], index: 3, kind: output, shape index: {}]  }
   0x1   :  { %v1643_v0 = vld [vmem:[%s1991_s1 + $0x38] sm:$0xff]   ;;  %v1644_v1 = vld [vmem:[%s1991_s1 + $0x30] sm:$0xff]   ;;  %v1645_v2 = vld [vmem:[%s1991_s1 + $0x28] sm:$0xff]  }
   0x2   :  { %1547 = vmatprep.subr.bf16.mxu0 %v1643_v0  ;;  %1627 = vmatprep.subr.bf16.mxu1 %v1643_v0  ;;  %v1646_v3 = vld [vmem:[%s1991_s1 + $0x20] sm:$0xff]   ;;  %v1647_v6 = vld [vmem:[%s1991_s1 + $0x18] sm:$0xff]   ;;  %v1648_v7 = vld [vmem:[%s1991_s1 + $0x10] sm:$0xff]  }
   0x3   :  { %1548 = vmatpush3.bf16.msra.mxu0 %v1643_v0  ;;  %1635 = vmatpush3.bf16.msra.mxu1 %v1643_v0  ;;  %v1651_v4 = vld [vmem:[%s1992_s0] sm:$0xff]   ;;  %v1649_v8 = vld [vmem:[%s1991_s1 + $0x8] sm:$0xff]   ;;  %v1655_v12 = vld [vmem:[%s1992_s0 + $0x10] sm:$0xff]  }
   0x4   :  { %1549 = vmatprep.subr.bf16.mxu0 %v1644_v1  ;;  %1628 = vmatprep.subr.bf16.mxu1 %v1644_v1  ;;  %v1652_v5 = vld [vmem:[%s1992_s0 + $0x80] sm:$0xff]   ;;  %v1653_v10 = vld [vmem:[%s1992_s0 + $0x8] sm:$0xff]   ;;  %v1656_v13 = vld [vmem:[%s1992_s0 + $0x90] sm:$0xff]  }
   0x5   :  { %1563 = vmatprep.mubr.bf16.mxu0 %v1651_v4  ;;  %1595 = vmatprep.mubr.bf16.mxu1 %v1652_v5  ;;  %v1650_v9 = vld [vmem:[%s1991_s1] sm:$0xff]   ;;  %v1654_v11 = vld [vmem:[%s1992_s0 + $0x88] sm:$0xff]   ;;  %v1657_v14 = vld [vmem:[%s1992_s0 + $0x18] sm:$0xff]  }
   0x6   :  { %v1658_v15 = vld [vmem:[%s1992_s0 + $0x98] sm:$0xff]   ;;  %v1659_v16 = vld [vmem:[%s1992_s0 + $0x20] sm:$0xff]   ;;  %v1661_v18 = vld [vmem:[%s1992_s0 + $0x28] sm:$0xff]  }
   0x7   :  { %1550 = vmatpush3.bf16.msra.mxu0 %v1644_v1  ;;  %1636 = vmatpush3.bf16.msra.mxu1 %v1644_v1  ;;  %v1660_v17 = vld [vmem:[%s1992_s0 + $0xa0] sm:$0xff]   ;;  %v1662_v19 = vld [vmem:[%s1992_s0 + $0xa8] sm:$0xff]   ;;  %v1663_v20 = vld [vmem:[%s1992_s0 + $0x30] sm:$0xff]  }
   0x8   :  { %1551 = vmatprep.subr.bf16.mxu0 %v1645_v2  ;;  %1629 = vmatprep.subr.bf16.mxu1 %v1645_v2  ;;  %v1664_v21 = vld [vmem:[%s1992_s0 + $0xb0] sm:$0xff]   ;;  %v1665_v22 = vld [vmem:[%s1992_s0 + $0x38] sm:$0xff]   ;;  %v1667_v24 = vld [vmem:[%s1992_s0 + $0x40] sm:$0xff]  }
   0x9   :  { %v1666_v23 = vld [vmem:[%s1992_s0 + $0xb8] sm:$0xff]   ;;  %v1668_v25 = vld [vmem:[%s1992_s0 + $0xc0] sm:$0xff]   ;;  %v1669_v26 = vld [vmem:[%s1992_s0 + $0x48] sm:$0xff]  }
   0xa   :  { %v1670_v27 = vld [vmem:[%s1992_s0 + $0xc8] sm:$0xff]   ;;  %v1671_v28 = vld [vmem:[%s1992_s0 + $0x50] sm:$0xff]   ;;  %v1673_v30 = vld [vmem:[%s1992_s0 + $0x58] sm:$0xff]  }
   0xb   :  { %1552 = vmatpush3.bf16.msra.mxu0 %v1645_v2  ;;  %1637 = vmatpush3.bf16.msra.mxu1 %v1645_v2  ;;  %v1672_v29 = vld [vmem:[%s1992_s0 + $0xd0] sm:$0xff]   ;;  %v1674_v31 = vld [vmem:[%s1992_s0 + $0xd8] sm:$0xff]   ;;  %v1675_v32 = vld [vmem:[%s1992_s0 + $0x60] sm:$0xff]  }
   0xc   :  { %1553 = vmatprep.subr.bf16.mxu0 %v1646_v3  ;;  %1630 = vmatprep.subr.bf16.mxu1 %v1646_v3  ;;  %v1676_v33 = vld [vmem:[%s1992_s0 + $0xe0] sm:$0xff]   ;;  %v1677_v34 = vld [vmem:[%s1992_s0 + $0x68] sm:$0xff]   ;;  %v1679_v36 = vld [vmem:[%s1992_s0 + $0x70] sm:$0xff]  }
   0xd   :  { %v1678_v35 = vld [vmem:[%s1992_s0 + $0xe8] sm:$0xff]   ;;  %v1680_v37 = vld [vmem:[%s1992_s0 + $0xf0] sm:$0xff]   ;;  %v1681_v38 = vld [vmem:[%s1992_s0 + $0x78] sm:$0xff]  }
   0xe   :  { %v1682_v39 = vld [vmem:[%s1992_s0 + $0xf8] sm:$0xff]   ;;  %v1826_v40 = vld [vmem:[%s1993_s2] ss:$0 sm:$0xff] }
   0xf   :  { %1554 = vmatpush3.bf16.msra.mxu0 %v1646_v3  ;;  %1638 = vmatpush3.bf16.msra.mxu1 %v1646_v3 }
  0x10   :  { %1555 = vmatprep.subr.bf16.mxu0 %v1647_v6  ;;  %1631 = vmatprep.subr.bf16.mxu1 %v1647_v6 }
  0x13   :  { %1556 = vmatpush3.bf16.msra.mxu0 %v1647_v6  ;;  %1639 = vmatpush3.bf16.msra.mxu1 %v1647_v6 }
  0x14   :  { %1557 = vmatprep.subr.bf16.mxu0 %v1648_v7  ;;  %1632 = vmatprep.subr.bf16.mxu1 %v1648_v7 }
  0x17   :  { %1558 = vmatpush3.bf16.msra.mxu0 %v1648_v7  ;;  %1640 = vmatpush3.bf16.msra.mxu1 %v1648_v7 }
  0x18   :  { %1559 = vmatprep.subr.bf16.mxu0 %v1649_v8  ;;  %1633 = vmatprep.subr.bf16.mxu1 %v1649_v8 }
  0x1b   :  { %1560 = vmatpush3.bf16.msra.mxu0 %v1649_v8  ;;  %1641 = vmatpush3.bf16.msra.mxu1 %v1649_v8 }
  0x1c   :  { %1561 = vmatprep.subr.bf16.mxu0 %v1650_v9  ;;  %1634 = vmatprep.subr.bf16.mxu1 %v1650_v9 }
  0x1f   :  { %1562 = vmatpush3.bf16.msra.mxu0 %v1650_v9  ;;  %1642 = vmatpush3.bf16.msra.mxu1 %v1650_v9 }
  0x22   :  { %1564 = vmatmul.mubr.bf16.vlgmr.msra.gmra.mxu0 %v1653_v10  ;;  %1596 = vmatmul.mubr.bf16.vlgmr.msra.gmra.mxu1 %v1654_v11 }
  0x23   :  { %1567 = vmatprep.mubr.bf16.mxu0 %v1655_v12  ;;  %1599 = vmatprep.mubr.bf16.mxu1 %v1656_v13 }
  0x2a   :  { %1568 = vmatmul.mubr.bf16.gmra.mxu0 %v1657_v14  ;;  %1600 = vmatmul.mubr.bf16.gmra.mxu1 %v1658_v15 }
  0x2b   :  { %1571 = vmatprep.mubr.bf16.mxu0 %v1659_v16  ;;  %1603 = vmatprep.mubr.bf16.mxu1 %v1660_v17 }
  0x32   :  { %1572 = vmatmul.mubr.bf16.gmra.mxu0 %v1661_v18  ;;  %1604 = vmatmul.mubr.bf16.gmra.mxu1 %v1662_v19 }
  0x33   :  { %1575 = vmatprep.mubr.bf16.mxu0 %v1663_v20  ;;  %1607 = vmatprep.mubr.bf16.mxu1 %v1664_v21 }
  0x3a   :  { %1576 = vmatmul.mubr.bf16.gmra.mxu0 %v1665_v22  ;;  %1608 = vmatmul.mubr.bf16.gmra.mxu1 %v1666_v23 }
  0x3b   :  { %1579 = vmatprep.mubr.bf16.mxu0 %v1667_v24  ;;  %1611 = vmatprep.mubr.bf16.mxu1 %v1668_v25 }
  0x42   :  { %1580 = vmatmul.mubr.bf16.gmra.mxu0 %v1669_v26  ;;  %1612 = vmatmul.mubr.bf16.gmra.mxu1 %v1670_v27 }
  0x43   :  { %1583 = vmatprep.mubr.bf16.mxu0 %v1671_v28  ;;  %1615 = vmatprep.mubr.bf16.mxu1 %v1672_v29 }
  0x4a   :  { %1584 = vmatmul.mubr.bf16.gmra.mxu0 %v1673_v30  ;;  %1616 = vmatmul.mubr.bf16.gmra.mxu1 %v1674_v31 }
  0x4b   :  { %1587 = vmatprep.mubr.bf16.mxu0 %v1675_v32  ;;  %1619 = vmatprep.mubr.bf16.mxu1 %v1676_v33 }
  0x52   :  { %1588 = vmatmul.mubr.bf16.gmra.mxu0 %v1677_v34  ;;  %1620 = vmatmul.mubr.bf16.gmra.mxu1 %v1678_v35 }
  0x53   :  { %1591 = vmatprep.mubr.bf16.mxu0 %v1679_v36  ;;  %1623 = vmatprep.mubr.bf16.mxu1 %v1680_v37 }
  0x5a   :  { %1592 = vmatmul.mubr.bf16.gmra.mxu0 %v1681_v38  ;;  %1624 = vmatmul.mubr.bf16.gmra.mxu1 %v1682_v39 }
  0xe2   :  { %v1565_v41 = vpop.f32.mrf.mxu0  ;;  %v1597_v42 = vpop.f32.mrf.mxu1 }
  0xe3   :  { %v385_v43 = vadd.f32 %v1565_v41, %v1826_v40  ;;  %v513_v44 = vadd.f32 %v1597_v42, %v1826_v40 }
  0xe4   :  { %v376_v45 = vpop.f32.mrf.mxu0  ;;  %v504_v46 = vpop.f32.mrf.mxu1 }
  0xe5   :  { %vm633_vm0 = vcmp.ge.f32.partialorder %v385_v43, 0.0  ;;  %v697_v47 = vmul.f32 0.2, %v385_v43  ;;  %vm665_vm1 = vcmp.ge.f32.partialorder %v513_v44, 0.0  ;;  %v729_v48 = vmul.f32 0.2, %v513_v44 }
  0xe6   :  { %v377_v49 = vadd.f32 %v1826_v40, %v376_v45  ;;  %v505_v50 = vadd.f32 %v1826_v40, %v504_v46  ;;  %v1566_v51 = vpop.f32.mrf.mxu0  ;;  %v1598_v52 = vpop.f32.mrf.mxu1 }
  0xe7   :  { %v761_v53 = vsel %vm633_vm0, %v385_v43, %v697_v47  ;;  %v388_v54 = vadd.f32 %v1566_v51, %v1826_v40  ;;  %v516_v55 = vadd.f32 %v1598_v52, %v1826_v40  ;;  %v793_v56 = vsel %vm665_vm1, %v513_v44, %v729_v48 }
  0xe8   :  { %vm631_vm2 = vcmp.ge.f32.partialorder %v377_v49, 0.0  ;;  %v695_v57 = vmul.f32 0.2, %v377_v49  ;;  %vm663_vm3 = vcmp.ge.f32.partialorder %v505_v50, 0.0  ;;  %v379_v58 = vpop.f32.mrf.mxu0  ;;  %v507_v59 = vpop.f32.mrf.mxu1  ;;  %v727_v63 = vmul.f32 0.2, %v505_v50 }
  0xe9   :  { %vm634_vm4 = vcmp.ge.f32.partialorder %v388_v54, 0.0  ;;  %v698_v60 = vmul.f32 0.2, %v388_v54  ;;  %vm666_vm5 = vcmp.ge.f32.partialorder %v516_v55, 0.0  ;;  %v730_v61 = vmul.f32 0.2, %v516_v55 }
  0xea   :  { %v759_v62 = vsel %vm631_vm2, %v377_v49, %v695_v57  ;;  %v380_v0 = vadd.f32 %v1826_v40, %v379_v58  ;;  %v508_v1 = vadd.f32 %v1826_v40, %v507_v59  ;;  %v1569_v2 = vpop.f32.mrf.mxu0  ;;  %v1601_v3 = vpop.f32.mrf.mxu1  ;;  %v791_v15 = vsel %vm663_vm3, %v505_v50, %v727_v63 }
  0xeb   :  { %v762_v4 = vsel %vm634_vm4, %v388_v54, %v698_v60  ;;  %v794_v5 = vsel %vm666_vm5, %v516_v55, %v730_v61  ;;  %v401_v6 = vadd.f32 %v1569_v2, %v1826_v40  ;;  %v529_v7 = vadd.f32 %v1601_v3, %v1826_v40 }
  0xec   :  { %v1324_v8 = vpack.c.bf16 %v762_v4, %v761_v53  ;;  %v1404_v9 = vpack.c.bf16 %v794_v5, %v793_v56  ;;  %vm632_vm6 = vcmp.ge.f32.partialorder %v380_v0, 0.0  ;;  %v696_v10 = vmul.f32 0.2, %v380_v0  ;;  %v392_v11 = vpop.f32.mrf.mxu0  ;;  %v520_v12 = vpop.f32.mrf.mxu1 }
  0xed   :  { %vm664_vm7 = vcmp.ge.f32.partialorder %v508_v1, 0.0  ;;  %v728_v13 = vmul.f32 0.2, %v508_v1  ;;  %vm637_vm8 = vcmp.ge.f32.partialorder %v401_v6, 0.0  ;;  %v701_v14 = vmul.f32 0.2, %v401_v6 }
  0xee   :  { %1476 = vst [vmem:[%s1994_s3 + $0x8] sm:$0xff] %v1324_v8   ;;  %1492 = vst [vmem:[%s1994_s3 + $0x88] sm:$0xff] %v1404_v9   ;;  %v760_v16 = vsel %vm632_vm6, %v380_v0, %v696_v10  ;;  %v733_v17 = vmul.f32 0.2, %v529_v7  ;;  %v393_v18 = vadd.f32 %v1826_v40, %v392_v11  ;;  %v1570_v19 = vpop.f32.mrf.mxu0  ;;  %v1602_v20 = vpop.f32.mrf.mxu1  ;;  %vm669_vm9 = vcmp.ge.f32.partialorder %v529_v7, 0.0 }
  0xef   :  { %v1319_v21 = vpack.c.bf16 %v760_v16, %v759_v62  ;;  %v792_v22 = vsel %vm664_vm7, %v508_v1, %v728_v13  ;;  %v521_v23 = vadd.f32 %v1826_v40, %v520_v12  ;;  %v765_v25 = vsel %vm637_vm8, %v401_v6, %v701_v14 }
  0xf0   :  { %v1399_v24 = vpack.c.bf16 %v792_v22, %v791_v15  ;;  %vm635_vm10 = vcmp.ge.f32.partialorder %v393_v18, 0.0  ;;  %v699_v26 = vmul.f32 0.2, %v393_v18  ;;  %v395_v27 = vpop.f32.mrf.mxu0  ;;  %v523_v28 = vpop.f32.mrf.mxu1  ;;  %v404_v30 = vadd.f32 %v1570_v19, %v1826_v40 }
  0xf1   :  { %1320 = vst [vmem:[%s1994_s3] sm:$0xff] %v1319_v21   ;;  %vm667_vm11 = vcmp.ge.f32.partialorder %v521_v23, 0.0  ;;  %v731_v29 = vmul.f32 0.2, %v521_v23  ;;  %v532_v31 = vadd.f32 %v1602_v20, %v1826_v40  ;;  %v797_v32 = vsel %vm669_vm9, %v529_v7, %v733_v17 }
  0xf2   :  { %1491 = vst [vmem:[%s1994_s3 + $0x80] sm:$0xff] %v1399_v24   ;;  %v763_v33 = vsel %vm635_vm10, %v393_v18, %v699_v26  ;;  %v396_v34 = vadd.f32 %v1826_v40, %v395_v27  ;;  %v524_v35 = vadd.f32 %v1826_v40, %v523_v28  ;;  %v1573_v36 = vpop.f32.mrf.mxu0  ;;  %v1605_v37 = vpop.f32.mrf.mxu1  ;;  %vm638_vm12 = vcmp.ge.f32.partialorder %v404_v30, 0.0 }
  0xf3   :  { %v795_v38 = vsel %vm667_vm11, %v521_v23, %v731_v29  ;;  %v702_v39 = vmul.f32 0.2, %v404_v30  ;;  %vm670_vm13 = vcmp.ge.f32.partialorder %v532_v31, 0.0  ;;  %v734_v41 = vmul.f32 0.2, %v532_v31 }
  0xf4   :  { %vm636_vm14 = vcmp.ge.f32.partialorder %v396_v34, 0.0  ;;  %v700_v42 = vmul.f32 0.2, %v396_v34  ;;  %vm668_vm15 = vcmp.ge.f32.partialorder %v524_v35, 0.0  ;;  %v408_v43 = vpop.f32.mrf.mxu0  ;;  %v536_v44 = vpop.f32.mrf.mxu1  ;;  %v732_v46 = vmul.f32 0.2, %v524_v35 }
  0xf5   :  { %v766_v45 = vsel %vm638_vm12, %v404_v30, %v702_v39  ;;  %v417_v47 = vadd.f32 %v1573_v36, %v1826_v40  ;;  %v545_v48 = vadd.f32 %v1605_v37, %v1826_v40  ;;  %v798_v50 = vsel %vm670_vm13, %v532_v31, %v734_v41 }
  0xf6   :  { %v1334_v49 = vpack.c.bf16 %v766_v45, %v765_v25  ;;  %v764_v51 = vsel %vm636_vm14, %v396_v34, %v700_v42  ;;  %v409_v52 = vadd.f32 %v1826_v40, %v408_v43  ;;  %v1574_v53 = vpop.f32.mrf.mxu0  ;;  %v1606_v54 = vpop.f32.mrf.mxu1  ;;  %v1414_v55 = vpack.c.bf16 %v798_v50, %v797_v32 }
  0xf7   :  { %v1329_v56 = vpack.c.bf16 %v764_v51, %v763_v33  ;;  %v796_v57 = vsel %vm668_vm15, %v524_v35, %v732_v46  ;;  %vm641_vm0 = vcmp.ge.f32.partialorder %v417_v47, 0.0  ;;  %v705_v59 = vmul.f32 0.2, %v417_v47 }
  0xf8   :  { %1478 = vst [vmem:[%s1994_s3 + $0x18] sm:$0xff] %v1334_v49   ;;  %v1409_v58 = vpack.c.bf16 %v796_v57, %v795_v38  ;;  %vm673_vm1 = vcmp.ge.f32.partialorder %v545_v48, 0.0  ;;  %v737_v60 = vmul.f32 0.2, %v545_v48  ;;  %v411_v61 = vpop.f32.mrf.mxu0  ;;  %v539_v62 = vpop.f32.mrf.mxu1  ;;  %1494 = vst [vmem:[%s1994_s3 + $0x98] sm:$0xff] %v1414_v55   ;;  %vm639_vm2 = vcmp.ge.f32.partialorder %v409_v52, 0.0 }
  0xf9   :  { %1477 = vst [vmem:[%s1994_s3 + $0x10] sm:$0xff] %v1329_v56   ;;  %v703_v63 = vmul.f32 0.2, %v409_v52  ;;  %v537_v0 = vadd.f32 %v1826_v40, %v536_v44  ;;  %v420_v1 = vadd.f32 %v1574_v53, %v1826_v40  ;;  %v769_v2 = vsel %vm641_vm0, %v417_v47, %v705_v59 }
  0xfa   :  { %1493 = vst [vmem:[%s1994_s3 + $0x90] sm:$0xff] %v1409_v58   ;;  %v801_v3 = vsel %vm673_vm1, %v545_v48, %v737_v60  ;;  %v548_v4 = vadd.f32 %v1606_v54, %v1826_v40  ;;  %v412_v5 = vadd.f32 %v1826_v40, %v411_v61  ;;  %v1577_v6 = vpop.f32.mrf.mxu0  ;;  %v1609_v7 = vpop.f32.mrf.mxu1  ;;  %v540_v16 = vadd.f32 %v1826_v40, %v539_v62 }
  0xfb   :  { %v767_v8 = vsel %vm639_vm2, %v409_v52, %v703_v63  ;;  %vm671_vm3 = vcmp.ge.f32.partialorder %v537_v0, 0.0  ;;  %v735_v9 = vmul.f32 0.2, %v537_v0  ;;  %vm642_vm4 = vcmp.ge.f32.partialorder %v420_v1, 0.0 }
  0xfc   :  { %v706_v10 = vmul.f32 0.2, %v420_v1  ;;  %vm674_vm5 = vcmp.ge.f32.partialorder %v548_v4, 0.0  ;;  %v738_v11 = vmul.f32 0.2, %v548_v4  ;;  %vm640_vm6 = vcmp.ge.f32.partialorder %v412_v5, 0.0  ;;  %v424_v12 = vpop.f32.mrf.mxu0  ;;  %v552_v13 = vpop.f32.mrf.mxu1 }
  0xfd   :  { %v799_v14 = vsel %vm671_vm3, %v537_v0, %v735_v9  ;;  %v704_v15 = vmul.f32 0.2, %v412_v5  ;;  %v433_v17 = vadd.f32 %v1577_v6, %v1826_v40  ;;  %v561_v20 = vadd.f32 %v1609_v7, %v1826_v40 }
  0xfe   :  { %v770_v18 = vsel %vm642_vm4, %v420_v1, %v706_v10  ;;  %v802_v19 = vsel %vm674_vm5, %v548_v4, %v738_v11  ;;  %v425_v21 = vadd.f32 %v1826_v40, %v424_v12  ;;  %v1578_v22 = vpop.f32.mrf.mxu0  ;;  %v1610_v23 = vpop.f32.mrf.mxu1  ;;  %vm672_vm7 = vcmp.ge.f32.partialorder %v540_v16, 0.0 }
  0xff   :  { %v1344_v24 = vpack.c.bf16 %v770_v18, %v769_v2  ;;  %v1424_v25 = vpack.c.bf16 %v802_v19, %v801_v3  ;;  %v768_v26 = vsel %vm640_vm6, %v412_v5, %v704_v15  ;;  %v736_v28 = vmul.f32 0.2, %v540_v16 }
 0x100   :  { %v1339_v27 = vpack.c.bf16 %v768_v26, %v767_v8  ;;  %vm645_vm8 = vcmp.ge.f32.partialorder %v433_v17, 0.0  ;;  %v709_v29 = vmul.f32 0.2, %v433_v17  ;;  %v427_v30 = vpop.f32.mrf.mxu0  ;;  %v555_v31 = vpop.f32.mrf.mxu1  ;;  %vm677_vm9 = vcmp.ge.f32.partialorder %v561_v20, 0.0 }
 0x101   :  { %1480 = vst [vmem:[%s1994_s3 + $0x28] sm:$0xff] %v1344_v24   ;;  %1496 = vst [vmem:[%s1994_s3 + $0xa8] sm:$0xff] %v1424_v25   ;;  %v741_v32 = vmul.f32 0.2, %v561_v20  ;;  %vm643_vm10 = vcmp.ge.f32.partialorder %v425_v21, 0.0  ;;  %v800_v34 = vsel %vm672_vm7, %v540_v16, %v736_v28  ;;  %v553_v36 = vadd.f32 %v1826_v40, %v552_v13 }
 0x102   :  { %v707_v33 = vmul.f32 0.2, %v425_v21  ;;  %1479 = vst [vmem:[%s1994_s3 + $0x20] sm:$0xff] %v1339_v27   ;;  %v773_v35 = vsel %vm645_vm8, %v433_v17, %v709_v29  ;;  %v436_v37 = vadd.f32 %v1578_v22, %v1826_v40  ;;  %v1581_v38 = vpop.f32.mrf.mxu0  ;;  %v1613_v39 = vpop.f32.mrf.mxu1  ;;  %v1419_v41 = vpack.c.bf16 %v800_v34, %v799_v14 }
 0x103   :  { %v805_v42 = vsel %vm677_vm9, %v561_v20, %v741_v32  ;;  %v564_v44 = vadd.f32 %v1610_v23, %v1826_v40  ;;  %vm675_vm11 = vcmp.ge.f32.partialorder %v553_v36, 0.0  ;;  %v739_v45 = vmul.f32 0.2, %v553_v36 }
 0x104   :  { %v771_v43 = vsel %vm643_vm10, %v425_v21, %v707_v33  ;;  %vm646_vm12 = vcmp.ge.f32.partialorder %v436_v37, 0.0  ;;  %v710_v46 = vmul.f32 0.2, %v436_v37  ;;  %v440_v47 = vpop.f32.mrf.mxu0  ;;  %v568_v48 = vpop.f32.mrf.mxu1  ;;  %1495 = vst [vmem:[%s1994_s3 + $0xa0] sm:$0xff] %v1419_v41   ;;  %v428_v50 = vadd.f32 %v1826_v40, %v427_v30 }
 0x105   :  { %vm678_vm13 = vcmp.ge.f32.partialorder %v564_v44, 0.0  ;;  %v742_v49 = vmul.f32 0.2, %v564_v44  ;;  %v556_v51 = vadd.f32 %v1826_v40, %v555_v31  ;;  %v803_v52 = vsel %vm675_vm11, %v553_v36, %v739_v45 }
 0x106   :  { %v774_v53 = vsel %vm646_vm12, %v436_v37, %v710_v46  ;;  %v449_v54 = vadd.f32 %v1581_v38, %v1826_v40  ;;  %v577_v55 = vadd.f32 %v1613_v39, %v1826_v40  ;;  %v1582_v56 = vpop.f32.mrf.mxu0  ;;  %v1614_v57 = vpop.f32.mrf.mxu1  ;;  %vm644_vm14 = vcmp.ge.f32.partialorder %v428_v50, 0.0 }
 0x107   :  { %v1354_v58 = vpack.c.bf16 %v774_v53, %v773_v35  ;;  %v806_v59 = vsel %vm678_vm13, %v564_v44, %v742_v49  ;;  %v708_v60 = vmul.f32 0.2, %v428_v50  ;;  %vm676_vm15 = vcmp.ge.f32.partialorder %v556_v51, 0.0 }
 0x108   :  { %v1434_v61 = vpack.c.bf16 %v806_v59, %v805_v42  ;;  %v740_v62 = vmul.f32 0.2, %v556_v51  ;;  %vm649_vm0 = vcmp.ge.f32.partialorder %v449_v54, 0.0  ;;  %v443_v63 = vpop.f32.mrf.mxu0  ;;  %v571_v0 = vpop.f32.mrf.mxu1  ;;  %v713_v2 = vmul.f32 0.2, %v449_v54 }
 0x109   :  { %1482 = vst [vmem:[%s1994_s3 + $0x38] sm:$0xff] %v1354_v58   ;;  %v772_v1 = vsel %vm644_vm14, %v428_v50, %v708_v60  ;;  %vm681_vm1 = vcmp.ge.f32.partialorder %v577_v55, 0.0  ;;  %v745_v3 = vmul.f32 0.2, %v577_v55  ;;  %v441_v6 = vadd.f32 %v1826_v40, %v440_v47 }
 0x10a   :  { %1498 = vst [vmem:[%s1994_s3 + $0xb8] sm:$0xff] %v1434_v61   ;;  %v1349_v4 = vpack.c.bf16 %v772_v1, %v771_v43  ;;  %v804_v5 = vsel %vm676_vm15, %v556_v51, %v740_v62  ;;  %v569_v7 = vadd.f32 %v1826_v40, %v568_v48  ;;  %v1585_v8 = vpop.f32.mrf.mxu0  ;;  %v1617_v9 = vpop.f32.mrf.mxu1  ;;  %v777_v11 = vsel %vm649_vm0, %v449_v54, %v713_v2 }
 0x10b   :  { %v1429_v10 = vpack.c.bf16 %v804_v5, %v803_v52  ;;  %v809_v12 = vsel %vm681_vm1, %v577_v55, %v745_v3  ;;  %v452_v13 = vadd.f32 %v1582_v56, %v1826_v40  ;;  %vm647_vm2 = vcmp.ge.f32.partialorder %v441_v6, 0.0 }
 0x10c   :  { %1481 = vst [vmem:[%s1994_s3 + $0x30] sm:$0xff] %v1349_v4   ;;  %v711_v14 = vmul.f32 0.2, %v441_v6  ;;  %vm679_vm3 = vcmp.ge.f32.partialorder %v569_v7, 0.0  ;;  %v743_v15 = vmul.f32 0.2, %v569_v7  ;;  %v456_v16 = vpop.f32.mrf.mxu0  ;;  %v584_v17 = vpop.f32.mrf.mxu1  ;;  %v580_v19 = vadd.f32 %v1614_v57, %v1826_v40 }
 0x10d   :  { %1497 = vst [vmem:[%s1994_s3 + $0xb0] sm:$0xff] %v1429_v10   ;;  %vm650_vm4 = vcmp.ge.f32.partialorder %v452_v13, 0.0  ;;  %v714_v18 = vmul.f32 0.2, %v452_v13  ;;  %v444_v20 = vadd.f32 %v1826_v40, %v443_v63  ;;  %v572_v23 = vadd.f32 %v1826_v40, %v571_v0 }
 0x10e   :  { %v775_v21 = vsel %vm647_vm2, %v441_v6, %v711_v14  ;;  %v807_v22 = vsel %vm679_vm3, %v569_v7, %v743_v15  ;;  %v465_v24 = vadd.f32 %v1585_v8, %v1826_v40  ;;  %v1586_v25 = vpop.f32.mrf.mxu0  ;;  %v1618_v26 = vpop.f32.mrf.mxu1  ;;  %vm682_vm5 = vcmp.ge.f32.partialorder %v580_v19, 0.0 }
 0x10f   :  { %v778_v27 = vsel %vm650_vm4, %v452_v13, %v714_v18  ;;  %v746_v28 = vmul.f32 0.2, %v580_v19  ;;  %vm648_vm6 = vcmp.ge.f32.partialorder %v444_v20, 0.0  ;;  %v712_v30 = vmul.f32 0.2, %v444_v20 }
 0x110   :  { %v1364_v29 = vpack.c.bf16 %v778_v27, %v777_v11  ;;  %vm680_vm7 = vcmp.ge.f32.partialorder %v572_v23, 0.0  ;;  %v744_v31 = vmul.f32 0.2, %v572_v23  ;;  %v459_v32 = vpop.f32.mrf.mxu0  ;;  %v587_v33 = vpop.f32.mrf.mxu1  ;;  %vm653_vm8 = vcmp.ge.f32.partialorder %v465_v24, 0.0 }
 0x111   :  { %v810_v34 = vsel %vm682_vm5, %v580_v19, %v746_v28  ;;  %v717_v35 = vmul.f32 0.2, %v465_v24  ;;  %v593_v36 = vadd.f32 %v1617_v9, %v1826_v40  ;;  %v776_v38 = vsel %vm648_vm6, %v444_v20, %v712_v30 }
 0x112   :  { %1484 = vst [vmem:[%s1994_s3 + $0x48] sm:$0xff] %v1364_v29   ;;  %v1444_v37 = vpack.c.bf16 %v810_v34, %v809_v12  ;;  %v808_v39 = vsel %vm680_vm7, %v572_v23, %v744_v31  ;;  %v457_v41 = vadd.f32 %v1826_v40, %v456_v16  ;;  %v1589_v42 = vpop.f32.mrf.mxu0  ;;  %v1621_v43 = vpop.f32.mrf.mxu1  ;;  %v1359_v44 = vpack.c.bf16 %v776_v38, %v775_v21 }
 0x113   :  { %v1439_v45 = vpack.c.bf16 %v808_v39, %v807_v22  ;;  %v781_v46 = vsel %vm653_vm8, %v465_v24, %v717_v35  ;;  %vm685_vm9 = vcmp.ge.f32.partialorder %v593_v36, 0.0  ;;  %v749_v47 = vmul.f32 0.2, %v593_v36 }
 0x114   :  { %1500 = vst [vmem:[%s1994_s3 + $0xc8] sm:$0xff] %v1444_v37   ;;  %vm651_vm10 = vcmp.ge.f32.partialorder %v457_v41, 0.0  ;;  %v715_v48 = vmul.f32 0.2, %v457_v41  ;;  %v585_v49 = vadd.f32 %v1826_v40, %v584_v17  ;;  %v472_v50 = vpop.f32.mrf.mxu0  ;;  %v600_v51 = vpop.f32.mrf.mxu1  ;;  %1483 = vst [vmem:[%s1994_s3 + $0x40] sm:$0xff] %v1359_v44   ;;  %v468_v52 = vadd.f32 %v1586_v25, %v1826_v40 }
 0x115   :  { %1499 = vst [vmem:[%s1994_s3 + $0xc0] sm:$0xff] %v1439_v45   ;;  %v596_v53 = vadd.f32 %v1618_v26, %v1826_v40  ;;  %v460_v54 = vadd.f32 %v1826_v40, %v459_v32  ;;  %v588_v55 = vadd.f32 %v1826_v40, %v587_v33  ;;  %v813_v56 = vsel %vm685_vm9, %v593_v36, %v749_v47 }
 0x116   :  { %v779_v57 = vsel %vm651_vm10, %v457_v41, %v715_v48  ;;  %vm683_vm11 = vcmp.ge.f32.partialorder %v585_v49, 0.0  ;;  %v747_v58 = vmul.f32 0.2, %v585_v49  ;;  %v1590_v59 = vpop.f32.mrf.mxu0  ;;  %v1622_v60 = vpop.f32.mrf.mxu1  ;;  %vm654_vm12 = vcmp.ge.f32.partialorder %v468_v52, 0.0 }
 0x117   :  { %v718_v61 = vmul.f32 0.2, %v468_v52  ;;  %vm686_vm13 = vcmp.ge.f32.partialorder %v596_v53, 0.0  ;;  %v750_v62 = vmul.f32 0.2, %v596_v53  ;;  %vm652_vm14 = vcmp.ge.f32.partialorder %v460_v54, 0.0 }
 0x118   :  { %v811_v63 = vsel %vm683_vm11, %v585_v49, %v747_v58  ;;  %v716_v0 = vmul.f32 0.2, %v460_v54  ;;  %vm684_vm15 = vcmp.ge.f32.partialorder %v588_v55, 0.0  ;;  %v475_v1 = vpop.f32.mrf.mxu0  ;;  %v603_v2 = vpop.f32.mrf.mxu1  ;;  %v748_v5 = vmul.f32 0.2, %v588_v55 }
 0x119   :  { %v782_v3 = vsel %vm654_vm12, %v468_v52, %v718_v61  ;;  %v814_v4 = vsel %vm686_vm13, %v596_v53, %v750_v62  ;;  %v481_v6 = vadd.f32 %v1589_v42, %v1826_v40  ;;  %v609_v10 = vadd.f32 %v1621_v43, %v1826_v40 }
 0x11a   :  { %v1374_v7 = vpack.c.bf16 %v782_v3, %v781_v46  ;;  %v1454_v8 = vpack.c.bf16 %v814_v4, %v813_v56  ;;  %v780_v9 = vsel %vm652_vm14, %v460_v54, %v716_v0  ;;  %v1593_v11 = vpop.f32.mrf.mxu0  ;;  %v1625_v12 = vpop.f32.mrf.mxu1  ;;  %v812_v14 = vsel %vm684_vm15, %v588_v55, %v748_v5 }
 0x11b   :  { %v1369_v13 = vpack.c.bf16 %v780_v9, %v779_v57  ;;  %vm657_vm0 = vcmp.ge.f32.partialorder %v481_v6, 0.0  ;;  %v721_v15 = vmul.f32 0.2, %v481_v6  ;;  %v1449_v16 = vpack.c.bf16 %v812_v14, %v811_v63 }
 0x11c   :  { %1486 = vst [vmem:[%s1994_s3 + $0x58] sm:$0xff] %v1374_v7   ;;  %1502 = vst [vmem:[%s1994_s3 + $0xd8] sm:$0xff] %v1454_v8   ;;  %vm689_vm1 = vcmp.ge.f32.partialorder %v609_v10, 0.0  ;;  %v753_v17 = vmul.f32 0.2, %v609_v10  ;;  %v473_v18 = vadd.f32 %v1826_v40, %v472_v50  ;;  %v601_v19 = vadd.f32 %v1826_v40, %v600_v51  ;;  %v488_v25 = vpop.f32.mrf.mxu0  ;;  %v616_v26 = vpop.f32.mrf.mxu1 }
 0x11d   :  { %1485 = vst [vmem:[%s1994_s3 + $0x50] sm:$0xff] %v1369_v13   ;;  %v484_v20 = vadd.f32 %v1590_v59, %v1826_v40  ;;  %v612_v21 = vadd.f32 %v1622_v60, %v1826_v40  ;;  %1501 = vst [vmem:[%s1994_s3 + $0xd0] sm:$0xff] %v1449_v16   ;;  %v785_v22 = vsel %vm657_vm0, %v481_v6, %v721_v15 }
 0x11e   :  { %vm655_vm2 = vcmp.ge.f32.partialorder %v473_v18, 0.0  ;;  %v719_v23 = vmul.f32 0.2, %v473_v18  ;;  %v476_v24 = vadd.f32 %v1826_v40, %v475_v1  ;;  %v817_v27 = vsel %vm689_vm1, %v609_v10, %v753_v17  ;;  %v1594_v39 = vpop.f32.mrf.mxu0  ;;  %v1626_v41 = vpop.f32.mrf.mxu1 }
 0x11f   :  { %vm687_vm3 = vcmp.ge.f32.partialorder %v601_v19, 0.0  ;;  %vm658_vm4 = vcmp.ge.f32.partialorder %v484_v20, 0.0  ;;  %v722_v28 = vmul.f32 0.2, %v484_v20  ;;  %v751_v29 = vmul.f32 0.2, %v601_v19 }
 0x120   :  { %vm690_vm5 = vcmp.ge.f32.partialorder %v612_v21, 0.0  ;;  %v754_v30 = vmul.f32 0.2, %v612_v21  ;;  %vm656_vm6 = vcmp.ge.f32.partialorder %v476_v24, 0.0  ;;  %v783_v31 = vsel %vm655_vm2, %v473_v18, %v719_v23  ;;  %v491_v55 = vpop.f32.mrf.mxu0  ;;  %v619_v56 = vpop.f32.mrf.mxu1 }
 0x121   :  { %v786_v32 = vsel %vm658_vm4, %v484_v20, %v722_v28  ;;  %v720_v33 = vmul.f32 0.2, %v476_v24  ;;  %v604_v34 = vadd.f32 %v1826_v40, %v603_v2  ;;  %v497_v37 = vadd.f32 %v1593_v11, %v1826_v40 }
 0x122   :  { %v1384_v35 = vpack.c.bf16 %v786_v32, %v785_v22  ;;  %v818_v36 = vsel %vm690_vm5, %v612_v21, %v754_v30  ;;  %v625_v38 = vadd.f32 %v1625_v12, %v1826_v40  ;;  %v815_v45 = vsel %vm687_vm3, %v601_v19, %v751_v29 }
 0x123   :  { %v1464_v42 = vpack.c.bf16 %v818_v36, %v817_v27  ;;  %v784_v43 = vsel %vm656_vm6, %v476_v24, %v720_v33  ;;  %vm688_vm7 = vcmp.ge.f32.partialorder %v604_v34, 0.0  ;;  %v752_v44 = vmul.f32 0.2, %v604_v34 }
 0x124   :  { %1488 = vst [vmem:[%s1994_s3 + $0x68] sm:$0xff] %v1384_v35   ;;  %v1379_v46 = vpack.c.bf16 %v784_v43, %v783_v31  ;;  %vm661_vm8 = vcmp.ge.f32.partialorder %v497_v37, 0.0  ;;  %v725_v47 = vmul.f32 0.2, %v497_v37  ;;  %vm693_vm9 = vcmp.ge.f32.partialorder %v625_v38, 0.0 }
 0x125   :  { %1504 = vst [vmem:[%s1994_s3 + $0xe8] sm:$0xff] %v1464_v42   ;;  %v816_v48 = vsel %vm688_vm7, %v604_v34, %v752_v44  ;;  %v757_v49 = vmul.f32 0.2, %v625_v38  ;;  %v489_v50 = vadd.f32 %v1826_v40, %v488_v25  ;;  %v617_v52 = vadd.f32 %v1826_v40, %v616_v26 }
 0x126   :  { %1487 = vst [vmem:[%s1994_s3 + $0x60] sm:$0xff] %v1379_v46   ;;  %v1459_v51 = vpack.c.bf16 %v816_v48, %v815_v45  ;;  %v500_v53 = vadd.f32 %v1594_v39, %v1826_v40  ;;  %v628_v54 = vadd.f32 %v1626_v41, %v1826_v40  ;;  %v789_v57 = vsel %vm661_vm8, %v497_v37, %v725_v47 }
 0x127   :  { %v821_v58 = vsel %vm693_vm9, %v625_v38, %v757_v49  ;;  %v723_v60 = vmul.f32 0.2, %v489_v50  ;;  %v492_v62 = vadd.f32 %v1826_v40, %v491_v55  ;;  %v620_v63 = vadd.f32 %v1826_v40, %v619_v56 }
 0x128   :  { %1503 = vst [vmem:[%s1994_s3 + $0xe0] sm:$0xff] %v1459_v51   ;;  %vm662_vm10 = vcmp.ge.f32.partialorder %v500_v53, 0.0  ;;  %v726_v59 = vmul.f32 0.2, %v500_v53  ;;  %vm694_vm11 = vcmp.ge.f32.partialorder %v628_v54, 0.0  ;;  %vm659_vm12 = vcmp.ge.f32.partialorder %v489_v50, 0.0 }
 0x129   :  { %v758_v61 = vmul.f32 0.2, %v628_v54  ;;  %vm691_vm13 = vcmp.ge.f32.partialorder %v617_v52, 0.0  ;;  %v755_v0 = vmul.f32 0.2, %v617_v52  ;;  %vm660_vm14 = vcmp.ge.f32.partialorder %v492_v62, 0.0 }
 0x12a   :  { %v790_v1 = vsel %vm662_vm10, %v500_v53, %v726_v59  ;;  %v724_v4 = vmul.f32 0.2, %v492_v62  ;;  %vm692_vm15 = vcmp.ge.f32.partialorder %v620_v63, 0.0  ;;  %v756_v6 = vmul.f32 0.2, %v620_v63 }
 0x12b   :  { %v1394_v2 = vpack.c.bf16 %v790_v1, %v789_v57  ;;  %v822_v3 = vsel %vm694_vm11, %v628_v54, %v758_v61  ;;  %v787_v7 = vsel %vm659_vm12, %v489_v50, %v723_v60  ;;  %v819_v9 = vsel %vm691_vm13, %v617_v52, %v755_v0 }
 0x12c   :  { %v1474_v5 = vpack.c.bf16 %v822_v3, %v821_v58  ;;  %v788_v8 = vsel %vm660_vm14, %v492_v62, %v724_v4  ;;  %v820_v10 = vsel %vm692_vm15, %v620_v63, %v756_v6 }
 0x12d   :  { %1490 = vst [vmem:[%s1994_s3 + $0x78] sm:$0xff] %v1394_v2   ;;  %v1389_v40 = vpack.c.bf16 %v788_v8, %v787_v7  ;;  %v1469_v11 = vpack.c.bf16 %v820_v10, %v819_v9 }
 0x12e   :  { %1506 = vst [vmem:[%s1994_s3 + $0xf8] sm:$0xff] %v1474_v5  }
 0x12f   :  { %1489 = vst [vmem:[%s1994_s3 + $0x70] sm:$0xff] %v1389_v40   ;;  %1505 = vst [vmem:[%s1994_s3 + $0xf0] sm:$0xff] %v1469_v11  }

// kernel: discriminator_forward.4
= control target key start
LH: loop header
LB: loop body
LE: loop exit
PB: predicated region body
PF: predicated region fallthrough
CT: control target
= control target key end

     0   :  { %s966_s1 = inlined_call_operand.vmem [shape: bf16[128,128], index: 1, kind: input, shape index: {}]   ;;  %s967_s0 = inlined_call_operand.vmem [shape: bf16[128,128], index: 0, kind: input, shape index: {}]   ;;  %s968_s2 = inlined_call_operand.vmem [shape: f32[1,128], index: 2, kind: input, shape index: {}]   ;;  %s969_s3 = inlined_call_operand.vmem [shape: f32[1,128], index: 3, kind: input, shape index: {}]   ;;  %s970_s4 = inlined_call_operand.vmem [shape: f32[1,128], index: 4, kind: input, shape index: {}]   ;;  %s971_s5 = inlined_call_operand.vmem [shape: bf16[128,128], index: 5, kind: output, shape index: {}]  }
   0x1   :  { %v723_v0 = vld [vmem:[%s966_s1 + $0x38] sm:$0xff]   ;;  %v724_v1 = vld [vmem:[%s966_s1 + $0x30] sm:$0xff]   ;;  %v725_v2 = vld [vmem:[%s966_s1 + $0x28] sm:$0xff]  }
   0x2   :  { %675 = vmatprep.subr.bf16.mxu0 %v723_v0  ;;  %707 = vmatprep.subr.bf16.mxu1 %v723_v0  ;;  %v726_v3 = vld [vmem:[%s966_s1 + $0x20] sm:$0xff]   ;;  %v727_v5 = vld [vmem:[%s966_s1 + $0x18] sm:$0xff]   ;;  %v728_v7 = vld [vmem:[%s966_s1 + $0x10] sm:$0xff]  }
   0x3   :  { %676 = vmatpush3.bf16.msra.mxu0 %v723_v0  ;;  %715 = vmatpush3.bf16.msra.mxu1 %v723_v0  ;;  %v731_v4 = vld [vmem:[%s967_s0] sm:$0xff]   ;;  %v729_v8 = vld [vmem:[%s966_s1 + $0x8] sm:$0xff]   ;;  %v733_v12 = vld [vmem:[%s967_s0 + $0x10] sm:$0xff]  }
   0x4   :  { %677 = vmatprep.subr.bf16.mxu0 %v724_v1  ;;  %708 = vmatprep.subr.bf16.mxu1 %v724_v1  ;;  %v735_v6 = vld [vmem:[%s967_s0 + $0x20] sm:$0xff]   ;;  %v732_v10 = vld [vmem:[%s967_s0 + $0x8] sm:$0xff]   ;;  %v737_v13 = vld [vmem:[%s967_s0 + $0x30] sm:$0xff]  }
   0x5   :  { %691 = vmatprep.mubr.bf16.mxu0 %v731_v4  ;;  %699 = vmatprep.mubr.bf16.mxu1 %v735_v6  ;;  %v730_v9 = vld [vmem:[%s966_s1] sm:$0xff]   ;;  %v736_v11 = vld [vmem:[%s967_s0 + $0x28] sm:$0xff]   ;;  %v734_v14 = vld [vmem:[%s967_s0 + $0x18] sm:$0xff]  }
   0x6   :  { %v738_v15 = vld [vmem:[%s967_s0 + $0x38] sm:$0xff]   ;;  %v822_v20 = vld [vmem:[%s968_s2] ss:$0 sm:$0xff] }
   0x7   :  { %678 = vmatpush3.bf16.msra.mxu0 %v724_v1  ;;  %716 = vmatpush3.bf16.msra.mxu1 %v724_v1 }
   0x8   :  { %679 = vmatprep.subr.bf16.mxu0 %v725_v2  ;;  %709 = vmatprep.subr.bf16.mxu1 %v725_v2 }
   0xb   :  { %680 = vmatpush3.bf16.msra.mxu0 %v725_v2  ;;  %717 = vmatpush3.bf16.msra.mxu1 %v725_v2 }
   0xc   :  { %681 = vmatprep.subr.bf16.mxu0 %v726_v3  ;;  %710 = vmatprep.subr.bf16.mxu1 %v726_v3 }
   0xf   :  { %682 = vmatpush3.bf16.msra.mxu0 %v726_v3  ;;  %718 = vmatpush3.bf16.msra.mxu1 %v726_v3 }
  0x10   :  { %683 = vmatprep.subr.bf16.mxu0 %v727_v5  ;;  %711 = vmatprep.subr.bf16.mxu1 %v727_v5 }
  0x13   :  { %684 = vmatpush3.bf16.msra.mxu0 %v727_v5  ;;  %719 = vmatpush3.bf16.msra.mxu1 %v727_v5 }
  0x14   :  { %685 = vmatprep.subr.bf16.mxu0 %v728_v7  ;;  %712 = vmatprep.subr.bf16.mxu1 %v728_v7 }
  0x17   :  { %686 = vmatpush3.bf16.msra.mxu0 %v728_v7  ;;  %720 = vmatpush3.bf16.msra.mxu1 %v728_v7 }
  0x18   :  { %687 = vmatprep.subr.bf16.mxu0 %v729_v8  ;;  %713 = vmatprep.subr.bf16.mxu1 %v729_v8 }
  0x1b   :  { %688 = vmatpush3.bf16.msra.mxu0 %v729_v8  ;;  %721 = vmatpush3.bf16.msra.mxu1 %v729_v8 }
  0x1c   :  { %689 = vmatprep.subr.bf16.mxu0 %v730_v9  ;;  %714 = vmatprep.subr.bf16.mxu1 %v730_v9 }
  0x1f   :  { %690 = vmatpush3.bf16.msra.mxu0 %v730_v9  ;;  %722 = vmatpush3.bf16.msra.mxu1 %v730_v9 }
  0x22   :  { %692 = vmatmul.mubr.bf16.vlgmr.msra.gmra.mxu0 %v732_v10  ;;  %700 = vmatmul.mubr.bf16.vlgmr.msra.gmra.mxu1 %v736_v11 }
  0x23   :  { %695 = vmatprep.mubr.bf16.mxu0 %v733_v12  ;;  %703 = vmatprep.mubr.bf16.mxu1 %v737_v13 }
  0x2a   :  { %696 = vmatmul.mubr.bf16.gmra.mxu0 %v734_v14  ;;  %704 = vmatmul.mubr.bf16.gmra.mxu1 %v738_v15 }
  0xe2   :  { %v693_v16 = vpop.f32.mrf.mxu0  ;;  %v701_v17 = vpop.f32.mrf.mxu1 }
  0xe3   :  { %v828_v25 = vadd.f32 %v693_v16, %v822_v20  ;;  %v879_v63 = vadd.f32 %v701_v17, %v822_v20 }
  0xe4   :  { %v190_v18 = vpop.f32.mrf.mxu0  ;;  %v222_v19 = vpop.f32.mrf.mxu1 }
  0xe5   :  { %v825_v22 = vadd.f32 %v822_v20, %v190_v18  ;;  %v358_v34 = vmul.f32 %v828_v25, %v828_v25  ;;  %v869_v55 = vadd.f32 %v822_v20, %v222_v19  ;;  %v366_v8 = vmul.f32 %v879_v63, %v879_v63 }
  0xe6   :  { %v694_v21 = vpop.f32.mrf.mxu0  ;;  %v702_v24 = vpop.f32.mrf.mxu1 }
  0xe7   :  { %v356_v28 = vmul.f32 %v825_v22, %v825_v22  ;;  %v836_v29 = vadd.f32 %v694_v21, %v822_v20  ;;  %v364_v0 = vmul.f32 %v869_v55, %v869_v55  ;;  %v885_v3 = vadd.f32 %v702_v24, %v822_v20 }
  0xe8   :  { %v193_v23 = vpop.f32.mrf.mxu0  ;;  %v225_v33 = vpop.f32.mrf.mxu1 }
  0xe9   :  { %v831_v26 = vadd.f32 %v822_v20, %v193_v23  ;;  %v359_v39 = vmul.f32 %v836_v29, %v836_v29  ;;  %v875_v60 = vadd.f32 %v822_v20, %v225_v33  ;;  %v367_v12 = vmul.f32 %v885_v3, %v885_v3 }
  0xea   :  { %v697_v27 = vpop.f32.mrf.mxu0  ;;  %v705_v44 = vpop.f32.mrf.mxu1 }
  0xeb   :  { %v334_v30 = vadd.f32 %v831_v26, %v825_v22  ;;  %v357_v31 = vmul.f32 %v831_v26, %v831_v26  ;;  %v852_v42 = vadd.f32 %v697_v27, %v822_v20  ;;  %v365_v5 = vmul.f32 %v875_v60, %v875_v60 }
  0xec   :  { %v206_v32 = vpop.f32.mrf.mxu0  ;;  %v238_v53 = vpop.f32.mrf.mxu1  ;;  %v903_v16 = vadd.f32 %v705_v44, %v822_v20 }
  0xed   :  { %v335_v35 = vadd.f32 %v334_v30, %v828_v25  ;;  %v372_v36 = vadd.f32 %v357_v31, %v356_v28  ;;  %v846_v37 = vadd.f32 %v822_v20, %v206_v32  ;;  %v362_v54 = vmul.f32 %v852_v42, %v852_v42 }
  0xee   :  { %v698_v38 = vpop.f32.mrf.mxu0  ;;  %v706_v62 = vpop.f32.mrf.mxu1  ;;  %v894_v11 = vadd.f32 %v822_v20, %v238_v53  ;;  %v370_v28 = vmul.f32 %v903_v16, %v903_v16 }
  0xef   :  { %v373_v40 = vadd.f32 %v372_v36, %v358_v34  ;;  %v336_v41 = vadd.f32 %v335_v35, %v836_v29  ;;  %v360_v46 = vmul.f32 %v846_v37, %v846_v37  ;;  %v861_v50 = vadd.f32 %v698_v38, %v822_v20 }
  0xf0   :  { %v209_v43 = vpop.f32.mrf.mxu0  ;;  %v241_v7 = vpop.f32.mrf.mxu1  ;;  %v368_v18 = vmul.f32 %v894_v11, %v894_v11  ;;  %v909_v23 = vadd.f32 %v706_v62, %v822_v20 }
  0xf1   :  { %v337_v45 = vadd.f32 %v336_v41, %v846_v37  ;;  %v374_v47 = vadd.f32 %v373_v40, %v359_v39  ;;  %v858_v48 = vadd.f32 %v822_v20, %v209_v43  ;;  %v363_v58 = vmul.f32 %v861_v50, %v861_v50 }
  0xf2   :  { %v900_v15 = vadd.f32 %v822_v20, %v241_v7  ;;  %v371_v32 = vmul.f32 %v909_v23, %v909_v23 }
  0xf3   :  { %v375_v49 = vadd.f32 %v374_v47, %v360_v46  ;;  %v338_v51 = vadd.f32 %v337_v45, %v858_v48  ;;  %v361_v52 = vmul.f32 %v858_v48, %v858_v48 }
  0xf4   :  { %v369_v27 = vmul.f32 %v900_v15, %v900_v15 }
  0xf5   :  { %v339_v56 = vadd.f32 %v338_v51, %v852_v42  ;;  %v376_v57 = vadd.f32 %v375_v49, %v361_v52 }
  0xf7   :  { %v377_v59 = vadd.f32 %v376_v57, %v362_v54  ;;  %v340_v61 = vadd.f32 %v339_v56, %v861_v50 }
  0xf9   :  { %v341_v1 = vadd.f32 %v340_v61, %v869_v55  ;;  %v378_v2 = vadd.f32 %v377_v59, %v363_v58 }
  0xfb   :  { %v342_v4 = vadd.f32 %v341_v1, %v875_v60  ;;  %v379_v6 = vadd.f32 %v378_v2, %v364_v0 }
  0xfd   :  { %v343_v9 = vadd.f32 %v342_v4, %v879_v63  ;;  %v380_v10 = vadd.f32 %v379_v6, %v365_v5 }
  0xff   :  { %v381_v13 = vadd.f32 %v380_v10, %v366_v8  ;;  %v344_v14 = vadd.f32 %v343_v9, %v885_v3 }
 0x101   :  { %v345_v17 = vadd.f32 %v344_v14, %v894_v11  ;;  %v382_v19 = vadd.f32 %v381_v13, %v367_v12 }
 0x103   :  { %v383_v21 = vadd.f32 %v382_v19, %v368_v18  ;;  %v346_v24 = vadd.f32 %v345_v17, %v900_v15 }
 0x105   :  { %v347_v30 = vadd.f32 %v346_v24, %v903_v16  ;;  %v384_v31 = vadd.f32 %v383_v21, %v369_v27 }
 0x107   :  { %v348_v33 = vadd.f32 %v347_v30, %v909_v23  ;;  %v385_v34 = vadd.f32 %v384_v31, %v370_v28 }
 0x109   :  { %v349_v35 = vrot.slane %v348_v33, 4  ;;  %v386_v20 = vadd.f32 %v385_v34, %v371_v32  ;;  %v579_v32 = vld [vmem:[%s970_s4] ss:$0 sm:$0xff] }
 0x10b   :  { %v350_v36 = vadd.f32 %v349_v35, %v348_v33  ;;  %v387_v38 = vrot.slane %v386_v20, 4 }
 0x10d   :  { %v351_v39 = vrot.slane %v350_v36, 2  ;;  %v388_v40 = vadd.f32 %v387_v38, %v386_v20 }
 0x10f   :  { %v352_v41 = vadd.f32 %v351_v39, %v350_v36  ;;  %v389_v43 = vrot.slane %v388_v40, 2 }
 0x111   :  { %v353_v44 = vrot.slane %v352_v41, 1  ;;  %v390_v45 = vadd.f32 %v389_v43, %v388_v40 }
 0x113   :  { %v354_v46 = vadd.f32 %v353_v44, %v352_v41  ;;  %v391_v47 = vrot.slane %v390_v45, 1 }
 0x115   :  { %v355_v49 = vmul.f32 0.0078125, %v354_v46  ;;  %v392_v51 = vadd.f32 %v391_v47, %v390_v45 }
 0x117   :  { %v393_v52 = vmul.f32 0.0078125, %v392_v51  ;;  %v394_v53 = vmul.f32 %v355_v49, %v355_v49  ;;  %v397_v58 = vsub.f32 %v825_v22, %v355_v49  ;;  %v398_v59 = vsub.f32 %v831_v26, %v355_v49 }
 0x118   :  { %v399_v61 = vsub.f32 %v828_v25, %v355_v49  ;;  %v400_v62 = vsub.f32 %v836_v29, %v355_v49  ;;  %v401_v0 = vsub.f32 %v846_v37, %v355_v49  ;;  %v402_v1 = vsub.f32 %v858_v48, %v355_v49 }
 0x119   :  { %v395_v54 = vsub.f32 %v393_v52, %v394_v53  ;;  %v403_v2 = vsub.f32 %v852_v42, %v355_v49  ;;  %v404_v4 = vsub.f32 %v861_v50, %v355_v49  ;;  %v405_v5 = vsub.f32 %v869_v55, %v355_v49 }
 0x11a   :  { %v406_v6 = vsub.f32 %v875_v60, %v355_v49  ;;  %v407_v22 = vsub.f32 %v879_v63, %v355_v49  ;;  %v408_v26 = vsub.f32 %v885_v3, %v355_v49  ;;  %v409_v25 = vsub.f32 %v894_v11, %v355_v49  ;;  %v578_v63 = vld [vmem:[%s969_s3] ss:$0 sm:$0xff] }
 0x11b   :  { %v396_v56 = vmax.f32 %v395_v54, 0.0  ;;  %v410_v29 = vsub.f32 %v900_v15, %v355_v49  ;;  %v411_v37 = vsub.f32 %v903_v16, %v355_v49  ;;  %v412_v48 = vsub.f32 %v909_v23, %v355_v49 }
 0x11d   :  { %v413_v57 = vadd.f32 1e-05, %v396_v56 }
 0x11f   :  { %739 = vrsqrt.f32 %v413_v57 }
 0x12c   :  { %v740_v7 = vpop.eup %739 }
 0x12d   :  { %v415_v42 = vmul.f32 %v740_v7, %v397_v58  ;;  %v416_v8 = vmul.f32 %v740_v7, %v398_v59  ;;  %v417_v50 = vmul.f32 %v740_v7, %v399_v61  ;;  %v418_v9 = vmul.f32 %v740_v7, %v400_v62 }
 0x12e   :  { %v419_v55 = vmul.f32 %v740_v7, %v401_v0  ;;  %v420_v10 = vmul.f32 %v740_v7, %v402_v1  ;;  %v421_v60 = vmul.f32 %v740_v7, %v403_v2  ;;  %v422_v12 = vmul.f32 %v740_v7, %v404_v4 }
 0x12f   :  { %v423_v3 = vmul.f32 %v740_v7, %v405_v5  ;;  %v424_v11 = vmul.f32 %v740_v7, %v406_v6  ;;  %v425_v13 = vmul.f32 %v740_v7, %v407_v22  ;;  %v426_v14 = vmul.f32 %v740_v7, %v408_v26 }
 0x130   :  { %v427_v15 = vmul.f32 %v740_v7, %v409_v25  ;;  %v428_v16 = vmul.f32 %v740_v7, %v410_v29  ;;  %v429_v17 = vmul.f32 %v740_v7, %v411_v37  ;;  %v430_v18 = vmul.f32 %v740_v7, %v412_v48 }
 0x131   :  { %v438_v19 = vmul.f32 %v578_v63, %v415_v42  ;;  %v439_v21 = vmul.f32 %v578_v63, %v416_v8  ;;  %v440_v23 = vmul.f32 %v578_v63, %v417_v50  ;;  %v441_v24 = vmul.f32 %v578_v63, %v418_v9 }
 0x132   :  { %v442_v27 = vmul.f32 %v578_v63, %v419_v55  ;;  %v443_v28 = vmul.f32 %v578_v63, %v420_v10  ;;  %v444_v30 = vmul.f32 %v578_v63, %v421_v60  ;;  %v445_v31 = vmul.f32 %v578_v63, %v422_v12 }
 0x133   :  { %v446_v33 = vmul.f32 %v578_v63, %v423_v3  ;;  %v447_v34 = vmul.f32 %v578_v63, %v424_v11  ;;  %v448_v35 = vmul.f32 %v578_v63, %v425_v13  ;;  %v449_v20 = vmul.f32 %v578_v63, %v426_v14 }
 0x134   :  { %v450_v36 = vmul.f32 %v578_v63, %v427_v15  ;;  %v451_v38 = vmul.f32 %v578_v63, %v428_v16  ;;  %v452_v39 = vmul.f32 %v578_v63, %v429_v17  ;;  %v453_v40 = vmul.f32 %v578_v63, %v430_v18 }
 0x135   :  { %v461_v41 = vadd.f32 %v579_v32, %v438_v19  ;;  %v462_v43 = vadd.f32 %v579_v32, %v439_v21  ;;  %v463_v44 = vadd.f32 %v579_v32, %v440_v23  ;;  %v464_v45 = vadd.f32 %v579_v32, %v441_v24 }
 0x136   :  { %v465_v46 = vadd.f32 %v579_v32, %v442_v27  ;;  %v466_v47 = vadd.f32 %v579_v32, %v443_v28  ;;  %v467_v49 = vadd.f32 %v579_v32, %v444_v30  ;;  %v468_v51 = vadd.f32 %v579_v32, %v445_v31 }
 0x137   :  { %v469_v52 = vadd.f32 %v579_v32, %v446_v33  ;;  %v470_v53 = vadd.f32 %v579_v32, %v447_v34  ;;  %v471_v54 = vadd.f32 %v579_v32, %v448_v35  ;;  %v472_v56 = vadd.f32 %v579_v32, %v449_v20 }
 0x138   :  { %v473_v57 = vadd.f32 %v579_v32, %v450_v36  ;;  %v474_v58 = vadd.f32 %v579_v32, %v451_v38  ;;  %v475_v59 = vadd.f32 %v579_v32, %v452_v39  ;;  %v476_v61 = vadd.f32 %v579_v32, %v453_v40 }
 0x139   :  { %v615_v62 = vpack.c.bf16 %v462_v43, %v461_v41  ;;  %v620_v0 = vpack.c.bf16 %v464_v45, %v463_v44  ;;  %v625_v1 = vpack.c.bf16 %v466_v47, %v465_v46  ;;  %v630_v2 = vpack.c.bf16 %v468_v51, %v467_v49 }
 0x13a   :  { %v635_v4 = vpack.c.bf16 %v470_v53, %v469_v52  ;;  %v640_v5 = vpack.c.bf16 %v472_v56, %v471_v54  ;;  %v645_v6 = vpack.c.bf16 %v474_v58, %v473_v57  ;;  %v650_v22 = vpack.c.bf16 %v476_v61, %v475_v59 }
 0x13b   :  { %616 = vst [vmem:[%s971_s5] sm:$0xff] %v615_v62   ;;  %652 = vst [vmem:[%s971_s5 + $0x8] sm:$0xff] %v620_v0  }
 0x13c   :  { %653 = vst [vmem:[%s971_s5 + $0x10] sm:$0xff] %v625_v1   ;;  %654 = vst [vmem:[%s971_s5 + $0x18] sm:$0xff] %v630_v2  }
 0x13d   :  { %655 = vst [vmem:[%s971_s5 + $0x20] sm:$0xff] %v635_v4   ;;  %656 = vst [vmem:[%s971_s5 + $0x28] sm:$0xff] %v640_v5  }
 0x13e   :  { %657 = vst [vmem:[%s971_s5 + $0x30] sm:$0xff] %v645_v6   ;;  %658 = vst [vmem:[%s971_s5 + $0x38] sm:$0xff] %v650_v22  }

// kernel: discriminator_forward.5
= control target key start
LH: loop header
LB: loop body
LE: loop exit
PB: predicated region body
PF: predicated region fallthrough
CT: control target
= control target key end

     0   :  { %s560_s1 = inlined_call_operand.vmem [shape: bf16[256,128], index: 1, kind: input, shape index: {}]   ;;  %s561_s0 = inlined_call_operand.vmem [shape: bf16[32,256], index: 0, kind: input, shape index: {}]   ;;  %s562_s2 = inlined_call_operand.vmem [shape: f32[1,128], index: 2, kind: input, shape index: {}]   ;;  %s563_s3 = inlined_call_operand.vmem [shape: f32[1,128], index: 3, kind: input, shape index: {}]   ;;  %s564_s4 = inlined_call_operand.vmem [shape: f32[1,128], index: 4, kind: input, shape index: {}]   ;;  %s565_s5 = inlined_call_operand.vmem [shape: bf16[32,128], index: 5, kind: output, shape index: {}]  }
   0x1   :  { %v431_v0 = vld [vmem:[%s560_s1 + $0x78] sm:$0xff]   ;;  %v433_v2 = vld [vmem:[%s560_s1 + $0x70] sm:$0xff]   ;;  %v435_v4 = vld [vmem:[%s560_s1 + $0x68] sm:$0xff]  }
   0x2   :  { %v432_v1 = vld [vmem:[%s560_s1 + $0x38] sm:$0xff]   ;;  %387 = vmatprep.subr.bf16.mxu0 %v431_v0  ;;  %415 = vmatprep.subr.bf16.mxu1 %v431_v0  ;;  %v434_v3 = vld [vmem:[%s560_s1 + $0x30] sm:$0xff]   ;;  %v436_v5 = vld [vmem:[%s560_s1 + $0x28] sm:$0xff]  }
   0x3   :  { %388 = vmatpush3.bf16.msra.mxu0 %v432_v1  ;;  %423 = vmatpush3.bf16.msra.mxu1 %v432_v1  ;;  %v437_v6 = vld [vmem:[%s560_s1 + $0x60] sm:$0xff]   ;;  %v439_v8 = vld [vmem:[%s560_s1 + $0x58] sm:$0xff]   ;;  %v441_v10 = vld [vmem:[%s560_s1 + $0x50] sm:$0xff]  }
   0x4   :  { %389 = vmatprep.subr.bf16.mxu0 %v433_v2  ;;  %416 = vmatprep.subr.bf16.mxu1 %v433_v2  ;;  %v438_v7 = vld [vmem:[%s560_s1 + $0x20] sm:$0xff]   ;;  %v440_v9 = vld [vmem:[%s560_s1 + $0x18] sm:$0xff]   ;;  %v442_v13 = vld [vmem:[%s560_s1 + $0x10] sm:$0xff]  }
   0x5   :  { %v449_v11 = vld [vmem:[%s561_s0 + $0x4] ss:$8 sps:$4 sm:$0xff]   ;;  %v452_v12 = vld [vmem:[%s561_s0 + $0x14] ss:$8 sps:$4 sm:$0xff]   ;;  %v447_v18 = vld [vmem:[%s561_s0] ss:$8 sps:$4 sm:$0xff]  }
   0x6   :  { %v443_v14 = vld [vmem:[%s560_s1 + $0x48] sm:$0xff]   ;;  %212 = vmatprep.mubr.bf16.mxu0 %v449_v11  ;;  %220 = vmatprep.mubr.bf16.mxu1 %v452_v12  ;;  %v445_v16 = vld [vmem:[%s560_s1 + $0x40] sm:$0xff]   ;;  %v450_v19 = vld [vmem:[%s561_s0 + $0x10] ss:$8 sps:$4 sm:$0xff]  }
   0x7   :  { %390 = vmatpush3.bf16.msra.mxu0 %v434_v3  ;;  %424 = vmatpush3.bf16.msra.mxu1 %v434_v3  ;;  %v444_v15 = vld [vmem:[%s560_s1 + $0x8] sm:$0xff]   ;;  %v446_v17 = vld [vmem:[%s560_s1] sm:$0xff]  }
   0x8   :  { %391 = vmatprep.subr.bf16.mxu0 %v435_v4  ;;  %417 = vmatprep.subr.bf16.mxu1 %v435_v4  ;;  %v345_v25 = vld [vmem:[%s562_s2] ss:$0 sm:$0xff] }
   0x9   :  { %v367_v11 = vld [vmem:[%s564_s4] ss:$0 sm:$0xff] }
   0xb   :  { %392 = vmatpush3.bf16.msra.mxu0 %v436_v5  ;;  %425 = vmatpush3.bf16.msra.mxu1 %v436_v5 }
   0xc   :  { %393 = vmatprep.subr.bf16.mxu0 %v437_v6  ;;  %418 = vmatprep.subr.bf16.mxu1 %v437_v6  ;;  %v366_v6 = vld [vmem:[%s563_s3] ss:$0 sm:$0xff] }
   0xf   :  { %394 = vmatpush3.bf16.msra.mxu0 %v438_v7  ;;  %426 = vmatpush3.bf16.msra.mxu1 %v438_v7 }
  0x10   :  { %395 = vmatprep.subr.bf16.mxu0 %v439_v8  ;;  %419 = vmatprep.subr.bf16.mxu1 %v439_v8 }
  0x13   :  { %396 = vmatpush3.bf16.msra.mxu0 %v440_v9  ;;  %427 = vmatpush3.bf16.msra.mxu1 %v440_v9 }
  0x14   :  { %397 = vmatprep.subr.bf16.mxu0 %v441_v10  ;;  %420 = vmatprep.subr.bf16.mxu1 %v441_v10 }
  0x17   :  { %398 = vmatpush3.bf16.msra.mxu0 %v442_v13  ;;  %428 = vmatpush3.bf16.msra.mxu1 %v442_v13 }
  0x18   :  { %399 = vmatprep.subr.bf16.mxu0 %v443_v14  ;;  %421 = vmatprep.subr.bf16.mxu1 %v443_v14 }
  0x1b   :  { %400 = vmatpush3.bf16.msra.mxu0 %v444_v15  ;;  %429 = vmatpush3.bf16.msra.mxu1 %v444_v15 }
  0x1c   :  { %401 = vmatprep.subr.bf16.mxu0 %v445_v16  ;;  %422 = vmatprep.subr.bf16.mxu1 %v445_v16 }
  0x1f   :  { %402 = vmatpush3.bf16.msra.mxu0 %v446_v17  ;;  %430 = vmatpush3.bf16.msra.mxu1 %v446_v17 }
  0x22   :  { %213 = vmatmul.mubr.bf16.vlgmr.msra.gmra.mxu0 %v447_v18  ;;  %221 = vmatmul.mubr.bf16.vlgmr.msra.gmra.mxu1 %v450_v19 }
  0xe2   :  { %v403_v20 = vpop.f32.mrf.mxu0  ;;  %v409_v21 = vpop.f32.mrf.mxu1 }
  0xe4   :  { %v404_v22 = vpop.f32.mrf.mxu0  ;;  %v410_v23 = vpop.f32.mrf.mxu1 }
  0xe5   :  { %v405_v24 = vadd.f32 %v404_v22, %v403_v20  ;;  %v411_v28 = vadd.f32 %v410_v23, %v409_v21 }
  0xe6   :  { %v406_v26 = vpop.f32.mrf.mxu0  ;;  %v412_v27 = vpop.f32.mrf.mxu1 }
  0xe7   :  { %v215_v31 = vadd.f32 %v405_v24, %v345_v25  ;;  %v223_v34 = vadd.f32 %v411_v28, %v345_v25 }
  0xe8   :  { %v407_v29 = vpop.f32.mrf.mxu0  ;;  %v413_v30 = vpop.f32.mrf.mxu1 }
  0xe9   :  { %v408_v32 = vadd.f32 %v407_v29, %v406_v26  ;;  %v414_v33 = vadd.f32 %v413_v30, %v412_v27  ;;  %v260_v36 = vmul.f32 %v215_v31, %v215_v31  ;;  %v262_v40 = vmul.f32 %v223_v34, %v223_v34 }
  0xeb   :  { %v218_v35 = vadd.f32 %v408_v32, %v345_v25  ;;  %v226_v39 = vadd.f32 %v414_v33, %v345_v25 }
  0xed   :  { %v250_v37 = vadd.f32 %v218_v35, %v215_v31  ;;  %v261_v38 = vmul.f32 %v218_v35, %v218_v35  ;;  %v263_v44 = vmul.f32 %v226_v39, %v226_v39 }
  0xef   :  { %v264_v41 = vadd.f32 %v261_v38, %v260_v36  ;;  %v251_v42 = vadd.f32 %v250_v37, %v223_v34 }
  0xf1   :  { %v252_v43 = vadd.f32 %v251_v42, %v226_v39  ;;  %v265_v45 = vadd.f32 %v264_v41, %v262_v40 }
  0xf3   :  { %v253_v46 = vrot.slane %v252_v43, 4  ;;  %v266_v47 = vadd.f32 %v265_v45, %v263_v44 }
  0xf5   :  { %v254_v48 = vadd.f32 %v253_v46, %v252_v43  ;;  %v267_v49 = vrot.slane %v266_v47, 4 }
  0xf7   :  { %v255_v50 = vrot.slane %v254_v48, 2  ;;  %v268_v51 = vadd.f32 %v267_v49, %v266_v47 }
  0xf9   :  { %v256_v52 = vadd.f32 %v255_v50, %v254_v48  ;;  %v269_v53 = vrot.slane %v268_v51, 2 }
  0xfb   :  { %v257_v54 = vrot.slane %v256_v52, 1  ;;  %v270_v55 = vadd.f32 %v269_v53, %v268_v51 }
  0xfd   :  { %v258_v56 = vadd.f32 %v257_v54, %v256_v52  ;;  %v271_v57 = vrot.slane %v270_v55, 1 }
  0xff   :  { %v259_v58 = vmul.f32 0.03125, %v258_v56  ;;  %v272_v59 = vadd.f32 %v271_v57, %v270_v55 }
 0x101   :  { %v273_v60 = vmul.f32 0.03125, %v272_v59  ;;  %v274_v61 = vmul.f32 %v259_v58, %v259_v58  ;;  %v277_v1 = vsub.f32 %v215_v31, %v259_v58  ;;  %v278_v2 = vsub.f32 %v218_v35, %v259_v58 }
 0x102   :  { %v279_v3 = vsub.f32 %v223_v34, %v259_v58  ;;  %v280_v4 = vsub.f32 %v226_v39, %v259_v58 }
 0x103   :  { %v275_v62 = vsub.f32 %v273_v60, %v274_v61 }
 0x105   :  { %v276_v63 = vmax.f32 %v275_v62, 0.0 }
 0x107   :  { %v281_v0 = vadd.f32 1e-05, %v276_v63 }
 0x109   :  { %453 = vrsqrt.f32 %v281_v0 }
 0x116   :  { %v454_v5 = vpop.eup %453 }
 0x117   :  { %v283_v7 = vmul.f32 %v454_v5, %v277_v1  ;;  %v284_v8 = vmul.f32 %v454_v5, %v278_v2  ;;  %v285_v9 = vmul.f32 %v454_v5, %v279_v3  ;;  %v286_v10 = vmul.f32 %v454_v5, %v280_v4 }
 0x119   :  { %v294_v12 = vmul.f32 %v366_v6, %v283_v7  ;;  %v295_v13 = vmul.f32 %v366_v6, %v284_v8  ;;  %v296_v14 = vmul.f32 %v366_v6, %v285_v9  ;;  %v297_v15 = vmul.f32 %v366_v6, %v286_v10 }
 0x11b   :  { %v305_v16 = vadd.f32 %v367_v11, %v294_v12  ;;  %v306_v17 = vadd.f32 %v367_v11, %v295_v13  ;;  %v307_v18 = vadd.f32 %v367_v11, %v296_v14  ;;  %v308_v19 = vadd.f32 %v367_v11, %v297_v15 }
 0x11d   :  { %vm309_vm0 = vcmp.ge.f32.partialorder %v305_v16, 0.0  ;;  %vm310_vm1 = vcmp.ge.f32.partialorder %v306_v17, 0.0  ;;  %vm311_vm2 = vcmp.ge.f32.partialorder %v307_v18, 0.0  ;;  %vm312_vm3 = vcmp.ge.f32.partialorder %v308_v19, 0.0 }
 0x11e   :  { %v313_v20 = vmul.f32 0.2, %v305_v16  ;;  %v314_v21 = vmul.f32 0.2, %v306_v17  ;;  %v315_v22 = vmul.f32 0.2, %v307_v18 }
 0x11f   :  { %v316_v23 = vmul.f32 0.2, %v308_v19 }
 0x120   :  { %v317_v24 = vsel %vm309_vm0, %v305_v16, %v313_v20  ;;  %v318_v25 = vsel %vm310_vm1, %v306_v17, %v314_v21  ;;  %v319_v26 = vsel %vm311_vm2, %v307_v18, %v315_v22 }
 0x121   :  { %v320_v27 = vsel %vm312_vm3, %v308_v19, %v316_v23  ;;  %v379_v28 = vpack.c.bf16 %v318_v25, %v317_v24 }
 0x122   :  { %v384_v29 = vpack.c.bf16 %v320_v27, %v319_v26 }
 0x123   :  { %380 = vst [vmem:[%s565_s5] sm:$0xff] %v379_v28  }
 0x124   :  { %386 = vst [vmem:[%s565_s5 + $0x8] sm:$0xff] %v384_v29  }

</bundles_post_ra>
